<compile_context>
chip_gen: v7x
topology: tpu7x:2x2x1
jax: 0.10.0
libtpu: 0.0.40
codegen_flags: <defaults>
</compile_context>

<pallas_src>
import math
import functools

import jax
import jax.numpy as jnp
from jax import lax
from jax.experimental import pallas as pl
from jax.experimental.pallas import tpu as pltpu


# ----------------------------------------------------------------------------
# Kernel helpers
# ----------------------------------------------------------------------------
def _layer_norm(x, gamma, beta, eps=1e-5):
    # x: (R, E) f32; gamma/beta: (1, E). Matches torch.nn.LayerNorm (biased var).
    mean = jnp.mean(x, axis=-1, keepdims=True)
    var = jnp.mean((x - mean) ** 2, axis=-1, keepdims=True)
    inv = lax.rsqrt(var + eps)
    return (x - mean) * inv * gamma + beta


# ----------------------------------------------------------------------------
# Kernel 1: all decoder layers.  grid = (batch_chunk, layer)
# The output block (constant block index across the layer axis) is the resident
# activation carry.
# ----------------------------------------------------------------------------
def decoder_layers_kernel(mask_ref,                  # (S, S)      f32  additive causal mask
                          x_ref,                     # (R, E)      f32  embedded input slab
                          wqkv_ref, bqkv_ref,        # (E, 2E+HE) bf16, (1, 2E+HE) f32
                          ln_ref,                    # (4, E)      f32  [g1, b1, g2, b2]
                          w1_ref, b1_ref,            # (E, F) bf16, (1, F) f32
                          w2_ref, b2_ref,            # (F, E) bf16, (1, E) f32
                          o_ref,                     # (R, E)      f32  activations (carried)
                          *, num_heads):
    l = pl.program_id(1)

    # Load the embedded input into the resident output block on the first layer.
    @pl.when(l == 0)
    def _():
        o_ref[...] = x_ref[...]

    x = o_ref[...]                                   # (R, E) f32, R = Bp * S
    R, E = x.shape
    S = mask_ref.shape[0]
    Bp = R // S
    H = num_heads
    Kd = E // H

    mask = mask_ref[...]                             # 0 on/below diag, -1e30 above

    # ---- merged Q/K/V projection for all heads: one wide bf16 matmul ----------
    # (1/sqrt(Kd) is pre-folded into the Q columns of wqkv/bqkv.)
    xb = x.astype(jnp.bfloat16)
    qkv = jnp.dot(xb, wqkv_ref[...],
                  preferred_element_type=jnp.float32) + bqkv_ref[...]  # (R, 2E+H*E)

    # ---- per-head causal attention, accumulated directly (no P/V staging) -----
    # TODO(synk): at realistic H/Kd, batch all heads into one (B*H)-batch-dim
    # contraction instead of this unrolled per-head loop with Kd-wide slices.
    attn = jnp.zeros((R, E), jnp.float32)
    for h in range(H):
        q = qkv[:, h * Kd:(h + 1) * Kd].reshape(Bp, S, Kd).astype(jnp.bfloat16)
        k = qkv[:, E + h * Kd:E + (h + 1) * Kd].reshape(Bp, S, Kd).astype(jnp.bfloat16)
        v = qkv[:, 2 * E + h * E:2 * E + (h + 1) * E].reshape(Bp, S, E).astype(jnp.bfloat16)
        s = jnp.einsum('bqd,bkd->bqk', q, k,
                       preferred_element_type=jnp.float32)             # (Bp, S, S)
        s = s + mask[None, :, :]
        m = jnp.max(s, axis=-1, keepdims=True)
        p = jnp.exp(s - m)
        p = p / jnp.sum(p, axis=-1, keepdims=True)                     # exact softmax
        attn = attn + jnp.einsum('bqk,bke->bqe', p.astype(jnp.bfloat16), v,
                                 preferred_element_type=jnp.float32).reshape(R, E)

    # ---- add & norm 1 ----------------------------------------------------------
    x1 = _layer_norm(x + attn, ln_ref[0:1, :], ln_ref[1:2, :])

    # ---- feed forward: Linear -> ReLU -> Linear --------------------------------
    # TODO(synk): at realistic E/F (esp. v7x 64 MiB VMEM), tile wqkv/w1/w2 along
    # their wide dims with an extra 'arbitrary' reduction grid axis.
    h1 = jnp.dot(x1.astype(jnp.bfloat16), w1_ref[...],
                 preferred_element_type=jnp.float32) + b1_ref[...]
    h1 = jnp.maximum(h1, 0.0)
    ff = jnp.dot(h1.astype(jnp.bfloat16), w2_ref[...],
                 preferred_element_type=jnp.float32) + b2_ref[...]

    # ---- add & norm 2; carry to next layer via the resident output block -------
    o_ref[...] = _layer_norm(x1 + ff, ln_ref[2:3, :], ln_ref[3:4, :])


# ----------------------------------------------------------------------------
# Kernel 2: final vocab projection + softmax (outside the layer loop).
# ----------------------------------------------------------------------------
def vocab_softmax_kernel(x_ref, w_ref, b_ref, o_ref):
    # TODO(synk): at realistic vocab sizes, tile w_out along V (online softmax)
    # instead of loading the full (E, V) block.
    logits = jnp.dot(x_ref[...].astype(jnp.bfloat16), w_ref[...],
                     preferred_element_type=jnp.float32) + b_ref[...]
    m = jnp.max(logits, axis=-1, keepdims=True)
    p = jnp.exp(logits - m)
    o_ref[...] = p / jnp.sum(p, axis=-1, keepdims=True)


# ----------------------------------------------------------------------------
# Wrapper
# ----------------------------------------------------------------------------
def transformer_forward(token_ids, params, pe, *, num_heads):
    # glue: embedding lookup + positional encoding (no clean Pallas win here)
    x = jnp.take(params["embedding"], token_ids, axis=0) + pe[None, :, :]
    B, S, E = x.shape
    L, _, QKV = params["wqkv"].shape
    F = params["w1"].shape[2]
    V = params["w_out"].shape[1]

    # Fold the batch into the matmul M dimension; keep a size-2 parallel axis for
    # megacore (v7x) when possible.
    BC = 2 if B % 2 == 0 else 1
    Bp = B // BC
    R = Bp * S
    x_slab = x.reshape(BC, R, E)

    # Additive causal mask, built once (0 on/below diagonal, -1e30 strictly above).
    row = lax.broadcasted_iota(jnp.int32, (S, S), 0)
    col = lax.broadcasted_iota(jnp.int32, (S, S), 1)
    mask = jnp.where(col > row, jnp.float32(-1e30), jnp.float32(0.0))

    kernel = functools.partial(decoder_layers_kernel, num_heads=num_heads)

    acts = pl.pallas_call(
        kernel,
        out_shape=jax.ShapeDtypeStruct((BC, R, E), jnp.float32),
        grid=(BC, L),
        in_specs=[
            pl.BlockSpec((S, S), lambda bc, l: (0, 0)),             # mask (resident)
            pl.BlockSpec((None, R, E), lambda bc, l: (bc, 0, 0)),   # embedded input
            pl.BlockSpec((None, E, QKV), lambda bc, l: (l, 0, 0)),  # wqkv (per layer)
            pl.BlockSpec((None, 1, QKV), lambda bc, l: (l, 0, 0)),  # bqkv
            pl.BlockSpec((None, 4, E), lambda bc, l: (l, 0, 0)),    # layernorm params
            pl.BlockSpec((None, E, F), lambda bc, l: (l, 0, 0)),    # w1
            pl.BlockSpec((None, 1, F), lambda bc, l: (l, 0, 0)),    # b1
            pl.BlockSpec((None, F, E), lambda bc, l: (l, 0, 0)),    # w2
            pl.BlockSpec((None, 1, E), lambda bc, l: (l, 0, 0)),    # b2
        ],
        out_specs=pl.BlockSpec((None, R, E), lambda bc, l: (bc, 0, 0)),
        compiler_params=pltpu.CompilerParams(
            dimension_semantics=("parallel", "arbitrary"),
            vmem_limit_bytes=48 * 1024 * 1024),                     # fits v7x's 64 MiB
    )(mask, x_slab, params["wqkv"], params["bqkv"], params["ln"],
      params["w1"], params["b1"], params["w2"], params["b2"])

    probs = pl.pallas_call(
        vocab_softmax_kernel,
        out_shape=jax.ShapeDtypeStruct((BC, R, V), jnp.float32),
        grid=(BC,),
        in_specs=[
            pl.BlockSpec((None, R, E), lambda bc: (bc, 0, 0)),
            pl.BlockSpec((E, V), lambda bc: (0, 0)),                # w_out (resident)
            pl.BlockSpec((1, V), lambda bc: (0, 0)),                # b_out
        ],
        out_specs=pl.BlockSpec((None, R, V), lambda bc: (bc, 0, 0)),
        compiler_params=pltpu.CompilerParams(
            dimension_semantics=("parallel",)),
    )(acts, params["w_out"], params["b_out"])

    return probs.reshape(B, S, V)


# ----------------------------------------------------------------------------
# Parameter init + positional encoding
# ----------------------------------------------------------------------------
def make_positional_encoding(seq_len, d_model):
    position = jnp.arange(seq_len, dtype=jnp.float32)[:, None]
    div_term = jnp.exp(jnp.arange(0, d_model, 2, dtype=jnp.float32)
                       * (-math.log(10000.0) / d_model))
    pe = jnp.zeros((seq_len, d_model), dtype=jnp.float32)
    pe = pe.at[:, 0::2].set(jnp.sin(position * div_term))
    pe = pe.at[:, 1::2].set(jnp.cos(position * div_term))
    return pe


def init_params(key, *, vocab_size, embedding_size, num_heads, num_layers, ff_size):
    E, H, F, V, L = embedding_size, num_heads, ff_size, vocab_size, num_layers
    Kd = E // H
    QKV = 2 * E + H * E          # [WQ all heads | WK all heads | WV all heads]
    keys = jax.random.split(key, 5)

    def nrm(k, shape, scale=0.02):
        return scale * jax.random.normal(k, shape, dtype=jnp.float32)

    # Fold the 1/sqrt(Kd) attention scale into the Q columns (and Q bias) offline.
    wqkv = nrm(keys[1], (L, E, QKV))
    wqkv = wqkv.at[:, :, :E].multiply(1.0 / math.sqrt(Kd))

    ln = jnp.zeros((L, 4, E), jnp.float32)
    ln = ln.at[:, 0, :].set(1.0).at[:, 2, :].set(1.0)   # gammas = 1, betas = 0

    return {
        "embedding": jax.random.normal(keys[0], (V, E), dtype=jnp.float32),
        "wqkv": wqkv.astype(jnp.bfloat16),
        "bqkv": jnp.zeros((L, 1, QKV), jnp.float32),
        "ln": ln,
        "w1": nrm(keys[2], (L, E, F)).astype(jnp.bfloat16),
        "b1": jnp.zeros((L, 1, F), jnp.float32),
        "w2": nrm(keys[3], (L, F, E)).astype(jnp.bfloat16),
        "b2": jnp.zeros((L, 1, E), jnp.float32),
        "w_out": nrm(keys[4], (E, V)).astype(jnp.bfloat16),
        "b_out": jnp.zeros((1, V), jnp.float32),
    }


# ----------------------------------------------------------------------------
if __name__ == "__main__":
    batch = 4
    seq_len = 8
    embedding_size = 32
    num_heads = 4            # key_dim = 8
    num_layers = 2
    vocab_size = 64
    ff_size = 4 * embedding_size

    key = jax.random.PRNGKey(0)
    k_tok, k_par = jax.random.split(key)

    params = init_params(k_par, vocab_size=vocab_size, embedding_size=embedding_size,
                         num_heads=num_heads, num_layers=num_layers, ff_size=ff_size)
    pe = make_positional_encoding(seq_len, embedding_size)
    token_ids = jax.random.randint(k_tok, (batch, seq_len), 0, vocab_size, dtype=jnp.int32)

    fwd = jax.jit(functools.partial(transformer_forward, num_heads=num_heads))
    out = fwd(token_ids, params, pe)
    out = jax.block_until_ready(out)

    assert out.shape == (batch, seq_len, vocab_size)
    # final Softmax: rows sum to 1
    assert jnp.allclose(jnp.sum(out, axis=-1), 1.0, atol=1e-3)
    print("KERNEL_OK")
</pallas_src>

<mosaic_0001>
module attributes {stable_mosaic.version = 11 : i64} {
  func.func @vocab_softmax_kernel(%arg0: i32, %arg1: memref<1x16x32xf32, #tpu.memory_space<vmem>>, %arg2: memref<32x64xbf16, #tpu.memory_space<vmem>>, %arg3: memref<1x64xf32, #tpu.memory_space<vmem>>, %arg4: memref<1x16x64xf32, #tpu.memory_space<vmem>>) attributes {dimension_semantics = [#tpu.dimension_semantics<parallel>], iteration_bounds = array<i64: 2>, scalar_prefetch = 0 : i64, scratch_operands = 0 : i64, tpu.core_type = #tpu.core_type<tc>, window_params = [{transform_indices = @transform_0, window_bounds = array<i64: 1, 16, 32>}, {pipeline_mode = #tpu.pipeline_mode<synchronous>, transform_indices = @transform_1, window_bounds = array<i64: 32, 64>}, {pipeline_mode = #tpu.pipeline_mode<synchronous>, transform_indices = @transform_2, window_bounds = array<i64: 1, 64>}, {transform_indices = @transform_3, window_bounds = array<i64: 1, 16, 64>}]} {
    %c0 = arith.constant 0 : index
    %c0_0 = arith.constant 0 : index
    %c0_1 = arith.constant 0 : index
    %0 = vector.load %arg1[%c0, %c0_0, %c0_1] : memref<1x16x32xf32, #tpu.memory_space<vmem>>, vector<1x16x32xf32>
    %1 = vector.shape_cast %0 : vector<1x16x32xf32> to vector<16x32xf32>
    %2 = arith.truncf %1 : vector<16x32xf32> to vector<16x32xbf16>
    %c0_2 = arith.constant 0 : index
    %c0_3 = arith.constant 0 : index
    %3 = vector.load %arg2[%c0_2, %c0_3] : memref<32x64xbf16, #tpu.memory_space<vmem>>, vector<32x64xbf16>
    %cst = arith.constant dense<0.000000e+00> : vector<16x64xf32>
    %4 = tpu.matmul %2, %3, %cst {dimension_numbers = #tpu.dot_dimension_numbers<[1], [0], [0], [1], [0, 0, 1, 1], [], []>} : vector<16x32xbf16>, vector<32x64xbf16>, vector<16x64xf32> -> vector<16x64xf32>
    %c0_4 = arith.constant 0 : index
    %c0_5 = arith.constant 0 : index
    %5 = vector.load %arg3[%c0_4, %c0_5] : memref<1x64xf32, #tpu.memory_space<vmem>>, vector<1x64xf32>
    %6 = vector.broadcast %5 : vector<1x64xf32> to vector<16x64xf32>
    %7 = arith.addf %4, %6 : vector<16x64xf32>
    %cst_6 = arith.constant dense<0xFF800000> : vector<16xf32>
    %8 = vector.multi_reduction <maximumf>, %7, %cst_6 [1] : vector<16x64xf32> to vector<16xf32>
    %9 = vector.shape_cast %8 : vector<16xf32> to vector<16x1xf32>
    %10 = vector.broadcast %9 : vector<16x1xf32> to vector<16x64xf32>
    %11 = arith.subf %7, %10 : vector<16x64xf32>
    %12 = math.exp %11 : vector<16x64xf32>
    %cst_7 = arith.constant dense<0.000000e+00> : vector<16xf32>
    %13 = vector.multi_reduction <add>, %12, %cst_7 [1] : vector<16x64xf32> to vector<16xf32>
    %14 = vector.shape_cast %13 : vector<16xf32> to vector<16x1xf32>
    %15 = vector.broadcast %14 : vector<16x1xf32> to vector<16x64xf32>
    %16 = arith.divf %12, %15 : vector<16x64xf32>
    %c0_8 = arith.constant 0 : index
    %c0_9 = arith.constant 0 : index
    %c0_10 = arith.constant 0 : index
    %17 = vector.load %arg4[%c0_8, %c0_9, %c0_10] : memref<1x16x64xf32, #tpu.memory_space<vmem>>, vector<1x16x64xf32>
    %18 = vector.shape_cast %17 : vector<1x16x64xf32> to vector<16x64xf32>
    %19 = vector.shape_cast %16 : vector<16x64xf32> to vector<1x16x64xf32>
    tpu.vector_store %arg4[%c0_8, %c0_9, %c0_10], %19 {strides = array<i32>} : memref<1x16x64xf32, #tpu.memory_space<vmem>>, vector<1x16x64xf32>,
    return
  }
  func.func @transform_0(%arg0: i32) -> (i32, i32, i32) {
    %c0_i32 = arith.constant 0 : i32
    %c0_i32_0 = arith.constant 0 : i32
    %c0_i32_1 = arith.constant 0 : i32
    return %arg0, %c0_i32, %c0_i32_0 : i32, i32, i32
  }
  func.func @transform_1(%arg0: i32) -> (i32, i32) {
    %c0_i32 = arith.constant 0 : i32
    %c0_i32_0 = arith.constant 0 : i32
    %c0_i32_1 = arith.constant 0 : i32
    return %c0_i32, %c0_i32_0 : i32, i32
  }
  func.func @transform_2(%arg0: i32) -> (i32, i32) {
    %c0_i32 = arith.constant 0 : i32
    %c0_i32_0 = arith.constant 0 : i32
    %c0_i32_1 = arith.constant 0 : i32
    return %c0_i32, %c0_i32_0 : i32, i32
  }
  func.func @transform_3(%arg0: i32) -> (i32, i32, i32) {
    %c0_i32 = arith.constant 0 : i32
    %c0_i32_0 = arith.constant 0 : i32
    %c0_i32_1 = arith.constant 0 : i32
    return %arg0, %c0_i32, %c0_i32_0 : i32, i32, i32
  }
}

module attributes {stable_mosaic.version = 11 : i64} {
  func.func @decoder_layers_kernel(%arg0: i32, %arg1: i32, %arg2: memref<8x8xf32, #tpu.memory_space<vmem>>, %arg3: memref<1x16x32xf32, #tpu.memory_space<vmem>>, %arg4: memref<1x32x192xbf16, #tpu.memory_space<vmem>>, %arg5: memref<1x1x192xf32, #tpu.memory_space<vmem>>, %arg6: memref<1x4x32xf32, #tpu.memory_space<vmem>>, %arg7: memref<1x32x128xbf16, #tpu.memory_space<vmem>>, %arg8: memref<1x1x128xf32, #tpu.memory_space<vmem>>, %arg9: memref<1x128x32xbf16, #tpu.memory_space<vmem>>, %arg10: memref<1x1x32xf32, #tpu.memory_space<vmem>>, %arg11: memref<1x16x32xf32, #tpu.memory_space<vmem>>) attributes {dimension_semantics = [#tpu.dimension_semantics<parallel>, #tpu.dimension_semantics<arbitrary>], iteration_bounds = array<i64: 2, 2>, scalar_prefetch = 0 : i64, scratch_operands = 0 : i64, tpu.core_type = #tpu.core_type<tc>, window_params = [{pipeline_mode = #tpu.pipeline_mode<synchronous>, transform_indices = @transform_0, window_bounds = array<i64: 8, 8>}, {transform_indices = @transform_1, window_bounds = array<i64: 1, 16, 32>}, {transform_indices = @transform_2, window_bounds = array<i64: 1, 32, 192>}, {transform_indices = @transform_3, window_bounds = array<i64: 1, 1, 192>}, {transform_indices = @transform_4, window_bounds = array<i64: 1, 4, 32>}, {transform_indices = @transform_5, window_bounds = array<i64: 1, 32, 128>}, {transform_indices = @transform_6, window_bounds = array<i64: 1, 1, 128>}, {transform_indices = @transform_7, window_bounds = array<i64: 1, 128, 32>}, {transform_indices = @transform_8, window_bounds = array<i64: 1, 1, 32>}, {transform_indices = @transform_9, window_bounds = array<i64: 1, 16, 32>}]} {
    %c0_i32 = arith.constant 0 : i32
    %0 = arith.cmpi eq, %arg1, %c0_i32 : i32
    %1 = arith.extui %0 : i1 to i32
    %c0_i32_0 = arith.constant 0 : i32
    %2 = arith.cmpi ne, %1, %c0_i32_0 : i32
    scf.if %2 {
      %c0_65 = arith.constant 0 : index
      %c0_66 = arith.constant 0 : index
      %c0_67 = arith.constant 0 : index
      %194 = vector.load %arg3[%c0_65, %c0_66, %c0_67] : memref<1x16x32xf32, #tpu.memory_space<vmem>>, vector<1x16x32xf32>
      %195 = vector.shape_cast %194 : vector<1x16x32xf32> to vector<16x32xf32>
      %c0_68 = arith.constant 0 : index
      %c0_69 = arith.constant 0 : index
      %c0_70 = arith.constant 0 : index
      %196 = vector.load %arg11[%c0_68, %c0_69, %c0_70] : memref<1x16x32xf32, #tpu.memory_space<vmem>>, vector<1x16x32xf32>
      %197 = vector.shape_cast %196 : vector<1x16x32xf32> to vector<16x32xf32>
      %198 = vector.shape_cast %195 : vector<16x32xf32> to vector<1x16x32xf32>
      tpu.vector_store %arg11[%c0_68, %c0_69, %c0_70], %198 {strides = array<i32>} : memref<1x16x32xf32, #tpu.memory_space<vmem>>, vector<1x16x32xf32>,
    } else {
    }
    %c0 = arith.constant 0 : index
    %c0_1 = arith.constant 0 : index
    %c0_2 = arith.constant 0 : index
    %3 = vector.load %arg11[%c0, %c0_1, %c0_2] : memref<1x16x32xf32, #tpu.memory_space<vmem>>, vector<1x16x32xf32>
    %4 = vector.shape_cast %3 : vector<1x16x32xf32> to vector<16x32xf32>
    %c0_3 = arith.constant 0 : index
    %c0_4 = arith.constant 0 : index
    %5 = vector.load %arg2[%c0_3, %c0_4] : memref<8x8xf32, #tpu.memory_space<vmem>>, vector<8x8xf32>
    %6 = arith.truncf %4 : vector<16x32xf32> to vector<16x32xbf16>
    %c0_5 = arith.constant 0 : index
    %c0_6 = arith.constant 0 : index
    %c0_7 = arith.constant 0 : index
    %7 = vector.load %arg4[%c0_5, %c0_6, %c0_7] : memref<1x32x192xbf16, #tpu.memory_space<vmem>>, vector<1x32x192xbf16>
    %8 = vector.shape_cast %7 : vector<1x32x192xbf16> to vector<32x192xbf16>
    %cst = arith.constant dense<0.000000e+00> : vector<16x192xf32>
    %9 = tpu.matmul %6, %8, %cst {dimension_numbers = #tpu.dot_dimension_numbers<[1], [0], [0], [1], [0, 0, 1, 1], [], []>} : vector<16x32xbf16>, vector<32x192xbf16>, vector<16x192xf32> -> vector<16x192xf32>
    %c0_8 = arith.constant 0 : index
    %c0_9 = arith.constant 0 : index
    %c0_10 = arith.constant 0 : index
    %10 = vector.load %arg5[%c0_8, %c0_9, %c0_10] : memref<1x1x192xf32, #tpu.memory_space<vmem>>, vector<1x1x192xf32>
    %11 = vector.shape_cast %10 : vector<1x1x192xf32> to vector<1x192xf32>
    %12 = vector.broadcast %11 : vector<1x192xf32> to vector<16x192xf32>
    %13 = arith.addf %9, %12 : vector<16x192xf32>
    %cst_11 = arith.constant 0.000000e+00 : f32
    %14 = vector.broadcast %cst_11 : f32 to vector<16x32xf32>
    %15 = vector.extract_strided_slice %13 {offsets = [0, 0], sizes = [16, 8], strides = [1, 1]} : vector<16x192xf32> to vector<16x8xf32>
    %16 = vector.shape_cast %15 : vector<16x8xf32> to vector<2x8x8xf32>
    %17 = arith.truncf %16 : vector<2x8x8xf32> to vector<2x8x8xbf16>
    %18 = vector.extract_strided_slice %13 {offsets = [0, 32], sizes = [16, 8], strides = [1, 1]} : vector<16x192xf32> to vector<16x8xf32>
    %19 = vector.shape_cast %18 : vector<16x8xf32> to vector<2x8x8xf32>
    %20 = arith.truncf %19 : vector<2x8x8xf32> to vector<2x8x8xbf16>
    %21 = vector.extract_strided_slice %13 {offsets = [0, 64], sizes = [16, 32], strides = [1, 1]} : vector<16x192xf32> to vector<16x32xf32>
    %22 = vector.shape_cast %21 : vector<16x32xf32> to vector<2x8x32xf32>
    %23 = arith.truncf %22 : vector<2x8x32xf32> to vector<2x8x32xbf16>
    "tpu.trace_start"() <{level = 10 : i32, message = "bqd,bkd->bqk"}> : () -> ()
    %cst_12 = arith.constant dense<0.000000e+00> : vector<2x8x8xf32>
    %24 = tpu.matmul %17, %20, %cst_12 {dimension_numbers = #tpu.dot_dimension_numbers<[2], [2], [1], [1], [0, 0, 0, 1, 1, 1], [0], [0]>} : vector<2x8x8xbf16>, vector<2x8x8xbf16>, vector<2x8x8xf32> -> vector<2x8x8xf32>
    "tpu.trace_stop"() : () -> ()
    %25 = vector.shape_cast %5 : vector<8x8xf32> to vector<1x8x8xf32>
    %26 = vector.broadcast %25 : vector<1x8x8xf32> to vector<2x8x8xf32>
    %27 = arith.addf %24, %26 : vector<2x8x8xf32>
    %cst_13 = arith.constant dense<0xFF800000> : vector<2x8xf32>
    %28 = vector.multi_reduction <maximumf>, %27, %cst_13 [2] : vector<2x8x8xf32> to vector<2x8xf32>
    %29 = vector.shape_cast %28 : vector<2x8xf32> to vector<2x8x1xf32>
    %30 = vector.broadcast %29 : vector<2x8x1xf32> to vector<2x8x8xf32>
    %31 = arith.subf %27, %30 : vector<2x8x8xf32>
    %32 = math.exp %31 : vector<2x8x8xf32>
    %cst_14 = arith.constant dense<0.000000e+00> : vector<2x8xf32>
    %33 = vector.multi_reduction <add>, %32, %cst_14 [2] : vector<2x8x8xf32> to vector<2x8xf32>
    %34 = vector.shape_cast %33 : vector<2x8xf32> to vector<2x8x1xf32>
    %35 = vector.broadcast %34 : vector<2x8x1xf32> to vector<2x8x8xf32>
    %36 = arith.divf %32, %35 : vector<2x8x8xf32>
    %37 = arith.truncf %36 : vector<2x8x8xf32> to vector<2x8x8xbf16>
    "tpu.trace_start"() <{level = 10 : i32, message = "bqk,bke->bqe"}> : () -> ()
    %cst_15 = arith.constant dense<0.000000e+00> : vector<2x8x32xf32>
    %38 = tpu.matmul %37, %23, %cst_15 {dimension_numbers = #tpu.dot_dimension_numbers<[2], [1], [1], [2], [0, 0, 0, 1, 1, 2], [0], [0]>} : vector<2x8x8xbf16>, vector<2x8x32xbf16>, vector<2x8x32xf32> -> vector<2x8x32xf32>
    "tpu.trace_stop"() : () -> ()
    %39 = vector.shape_cast %38 : vector<2x8x32xf32> to vector<16x32xf32>
    %40 = arith.addf %14, %39 : vector<16x32xf32>
    %41 = vector.extract_strided_slice %13 {offsets = [0, 8], sizes = [16, 8], strides = [1, 1]} : vector<16x192xf32> to vector<16x8xf32>
    %42 = vector.shape_cast %41 : vector<16x8xf32> to vector<2x8x8xf32>
    %43 = arith.truncf %42 : vector<2x8x8xf32> to vector<2x8x8xbf16>
    %44 = vector.extract_strided_slice %13 {offsets = [0, 40], sizes = [16, 8], strides = [1, 1]} : vector<16x192xf32> to vector<16x8xf32>
    %45 = vector.shape_cast %44 : vector<16x8xf32> to vector<2x8x8xf32>
    %46 = arith.truncf %45 : vector<2x8x8xf32> to vector<2x8x8xbf16>
    %47 = vector.extract_strided_slice %13 {offsets = [0, 96], sizes = [16, 32], strides = [1, 1]} : vector<16x192xf32> to vector<16x32xf32>
    %48 = vector.shape_cast %47 : vector<16x32xf32> to vector<2x8x32xf32>
    %49 = arith.truncf %48 : vector<2x8x32xf32> to vector<2x8x32xbf16>
    "tpu.trace_start"() <{level = 10 : i32, message = "bqd,bkd->bqk"}> : () -> ()
    %cst_16 = arith.constant dense<0.000000e+00> : vector<2x8x8xf32>
    %50 = tpu.matmul %43, %46, %cst_16 {dimension_numbers = #tpu.dot_dimension_numbers<[2], [2], [1], [1], [0, 0, 0, 1, 1, 1], [0], [0]>} : vector<2x8x8xbf16>, vector<2x8x8xbf16>, vector<2x8x8xf32> -> vector<2x8x8xf32>
    "tpu.trace_stop"() : () -> ()
    %51 = vector.shape_cast %5 : vector<8x8xf32> to vector<1x8x8xf32>
    %52 = vector.broadcast %51 : vector<1x8x8xf32> to vector<2x8x8xf32>
    %53 = arith.addf %50, %52 : vector<2x8x8xf32>
    %cst_17 = arith.constant dense<0xFF800000> : vector<2x8xf32>
    %54 = vector.multi_reduction <maximumf>, %53, %cst_17 [2] : vector<2x8x8xf32> to vector<2x8xf32>
    %55 = vector.shape_cast %54 : vector<2x8xf32> to vector<2x8x1xf32>
    %56 = vector.broadcast %55 : vector<2x8x1xf32> to vector<2x8x8xf32>
    %57 = arith.subf %53, %56 : vector<2x8x8xf32>
    %58 = math.exp %57 : vector<2x8x8xf32>
    %cst_18 = arith.constant dense<0.000000e+00> : vector<2x8xf32>
    %59 = vector.multi_reduction <add>, %58, %cst_18 [2] : vector<2x8x8xf32> to vector<2x8xf32>
    %60 = vector.shape_cast %59 : vector<2x8xf32> to vector<2x8x1xf32>
    %61 = vector.broadcast %60 : vector<2x8x1xf32> to vector<2x8x8xf32>
    %62 = arith.divf %58, %61 : vector<2x8x8xf32>
    %63 = arith.truncf %62 : vector<2x8x8xf32> to vector<2x8x8xbf16>
    "tpu.trace_start"() <{level = 10 : i32, message = "bqk,bke->bqe"}> : () -> ()
    %cst_19 = arith.constant dense<0.000000e+00> : vector<2x8x32xf32>
    %64 = tpu.matmul %63, %49, %cst_19 {dimension_numbers = #tpu.dot_dimension_numbers<[2], [1], [1], [2], [0, 0, 0, 1, 1, 2], [0], [0]>} : vector<2x8x8xbf16>, vector<2x8x32xbf16>, vector<2x8x32xf32> -> vector<2x8x32xf32>
    "tpu.trace_stop"() : () -> ()
    %65 = vector.shape_cast %64 : vector<2x8x32xf32> to vector<16x32xf32>
    %66 = arith.addf %40, %65 : vector<16x32xf32>
    %67 = vector.extract_strided_slice %13 {offsets = [0, 16], sizes = [16, 8], strides = [1, 1]} : vector<16x192xf32> to vector<16x8xf32>
    %68 = vector.shape_cast %67 : vector<16x8xf32> to vector<2x8x8xf32>
    %69 = arith.truncf %68 : vector<2x8x8xf32> to vector<2x8x8xbf16>
    %70 = vector.extract_strided_slice %13 {offsets = [0, 48], sizes = [16, 8], strides = [1, 1]} : vector<16x192xf32> to vector<16x8xf32>
    %71 = vector.shape_cast %70 : vector<16x8xf32> to vector<2x8x8xf32>
    %72 = arith.truncf %71 : vector<2x8x8xf32> to vector<2x8x8xbf16>
    %73 = vector.extract_strided_slice %13 {offsets = [0, 128], sizes = [16, 32], strides = [1, 1]} : vector<16x192xf32> to vector<16x32xf32>
    %74 = vector.shape_cast %73 : vector<16x32xf32> to vector<2x8x32xf32>
    %75 = arith.truncf %74 : vector<2x8x32xf32> to vector<2x8x32xbf16>
    "tpu.trace_start"() <{level = 10 : i32, message = "bqd,bkd->bqk"}> : () -> ()
    %cst_20 = arith.constant dense<0.000000e+00> : vector<2x8x8xf32>
    %76 = tpu.matmul %69, %72, %cst_20 {dimension_numbers = #tpu.dot_dimension_numbers<[2], [2], [1], [1], [0, 0, 0, 1, 1, 1], [0], [0]>} : vector<2x8x8xbf16>, vector<2x8x8xbf16>, vector<2x8x8xf32> -> vector<2x8x8xf32>
    "tpu.trace_stop"() : () -> ()
    %77 = vector.shape_cast %5 : vector<8x8xf32> to vector<1x8x8xf32>
    %78 = vector.broadcast %77 : vector<1x8x8xf32> to vector<2x8x8xf32>
    %79 = arith.addf %76, %78 : vector<2x8x8xf32>
    %cst_21 = arith.constant dense<0xFF800000> : vector<2x8xf32>
    %80 = vector.multi_reduction <maximumf>, %79, %cst_21 [2] : vector<2x8x8xf32> to vector<2x8xf32>
    %81 = vector.shape_cast %80 : vector<2x8xf32> to vector<2x8x1xf32>
    %82 = vector.broadcast %81 : vector<2x8x1xf32> to vector<2x8x8xf32>
    %83 = arith.subf %79, %82 : vector<2x8x8xf32>
    %84 = math.exp %83 : vector<2x8x8xf32>
    %cst_22 = arith.constant dense<0.000000e+00> : vector<2x8xf32>
    %85 = vector.multi_reduction <add>, %84, %cst_22 [2] : vector<2x8x8xf32> to vector<2x8xf32>
    %86 = vector.shape_cast %85 : vector<2x8xf32> to vector<2x8x1xf32>
    %87 = vector.broadcast %86 : vector<2x8x1xf32> to vector<2x8x8xf32>
    %88 = arith.divf %84, %87 : vector<2x8x8xf32>
    %89 = arith.truncf %88 : vector<2x8x8xf32> to vector<2x8x8xbf16>
    "tpu.trace_start"() <{level = 10 : i32, message = "bqk,bke->bqe"}> : () -> ()
    %cst_23 = arith.constant dense<0.000000e+00> : vector<2x8x32xf32>
    %90 = tpu.matmul %89, %75, %cst_23 {dimension_numbers = #tpu.dot_dimension_numbers<[2], [1], [1], [2], [0, 0, 0, 1, 1, 2], [0], [0]>} : vector<2x8x8xbf16>, vector<2x8x32xbf16>, vector<2x8x32xf32> -> vector<2x8x32xf32>
    "tpu.trace_stop"() : () -> ()
    %91 = vector.shape_cast %90 : vector<2x8x32xf32> to vector<16x32xf32>
    %92 = arith.addf %66, %91 : vector<16x32xf32>
    %93 = vector.extract_strided_slice %13 {offsets = [0, 24], sizes = [16, 8], strides = [1, 1]} : vector<16x192xf32> to vector<16x8xf32>
    %94 = vector.shape_cast %93 : vector<16x8xf32> to vector<2x8x8xf32>
    %95 = arith.truncf %94 : vector<2x8x8xf32> to vector<2x8x8xbf16>
    %96 = vector.extract_strided_slice %13 {offsets = [0, 56], sizes = [16, 8], strides = [1, 1]} : vector<16x192xf32> to vector<16x8xf32>
    %97 = vector.shape_cast %96 : vector<16x8xf32> to vector<2x8x8xf32>
    %98 = arith.truncf %97 : vector<2x8x8xf32> to vector<2x8x8xbf16>
    %99 = vector.extract_strided_slice %13 {offsets = [0, 160], sizes = [16, 32], strides = [1, 1]} : vector<16x192xf32> to vector<16x32xf32>
    %100 = vector.shape_cast %99 : vector<16x32xf32> to vector<2x8x32xf32>
    %101 = arith.truncf %100 : vector<2x8x32xf32> to vector<2x8x32xbf16>
    "tpu.trace_start"() <{level = 10 : i32, message = "bqd,bkd->bqk"}> : () -> ()
    %cst_24 = arith.constant dense<0.000000e+00> : vector<2x8x8xf32>
    %102 = tpu.matmul %95, %98, %cst_24 {dimension_numbers = #tpu.dot_dimension_numbers<[2], [2], [1], [1], [0, 0, 0, 1, 1, 1], [0], [0]>} : vector<2x8x8xbf16>, vector<2x8x8xbf16>, vector<2x8x8xf32> -> vector<2x8x8xf32>
    "tpu.trace_stop"() : () -> ()
    %103 = vector.shape_cast %5 : vector<8x8xf32> to vector<1x8x8xf32>
    %104 = vector.broadcast %103 : vector<1x8x8xf32> to vector<2x8x8xf32>
    %105 = arith.addf %102, %104 : vector<2x8x8xf32>
    %cst_25 = arith.constant dense<0xFF800000> : vector<2x8xf32>
    %106 = vector.multi_reduction <maximumf>, %105, %cst_25 [2] : vector<2x8x8xf32> to vector<2x8xf32>
    %107 = vector.shape_cast %106 : vector<2x8xf32> to vector<2x8x1xf32>
    %108 = vector.broadcast %107 : vector<2x8x1xf32> to vector<2x8x8xf32>
    %109 = arith.subf %105, %108 : vector<2x8x8xf32>
    %110 = math.exp %109 : vector<2x8x8xf32>
    %cst_26 = arith.constant dense<0.000000e+00> : vector<2x8xf32>
    %111 = vector.multi_reduction <add>, %110, %cst_26 [2] : vector<2x8x8xf32> to vector<2x8xf32>
    %112 = vector.shape_cast %111 : vector<2x8xf32> to vector<2x8x1xf32>
    %113 = vector.broadcast %112 : vector<2x8x1xf32> to vector<2x8x8xf32>
    %114 = arith.divf %110, %113 : vector<2x8x8xf32>
    %115 = arith.truncf %114 : vector<2x8x8xf32> to vector<2x8x8xbf16>
    "tpu.trace_start"() <{level = 10 : i32, message = "bqk,bke->bqe"}> : () -> ()
    %cst_27 = arith.constant dense<0.000000e+00> : vector<2x8x32xf32>
    %116 = tpu.matmul %115, %101, %cst_27 {dimension_numbers = #tpu.dot_dimension_numbers<[2], [1], [1], [2], [0, 0, 0, 1, 1, 2], [0], [0]>} : vector<2x8x8xbf16>, vector<2x8x32xbf16>, vector<2x8x32xf32> -> vector<2x8x32xf32>
    "tpu.trace_stop"() : () -> ()
    %117 = vector.shape_cast %116 : vector<2x8x32xf32> to vector<16x32xf32>
    %118 = arith.addf %92, %117 : vector<16x32xf32>
    %119 = arith.addf %4, %118 : vector<16x32xf32>
    %c0_28 = arith.constant 0 : index
    %c0_29 = arith.constant 0 : index
    %c0_30 = arith.constant 0 : index
    %120 = vector.load %arg6[%c0_28, %c0_29, %c0_30] : memref<1x4x32xf32, #tpu.memory_space<vmem>>, vector<1x1x32xf32>
    %121 = vector.shape_cast %120 : vector<1x1x32xf32> to vector<1x32xf32>
    %c0_31 = arith.constant 0 : index
    %c1 = arith.constant 1 : index
    %c0_32 = arith.constant 0 : index
    %122 = vector.load %arg6[%c0_31, %c1, %c0_32] : memref<1x4x32xf32, #tpu.memory_space<vmem>>, vector<1x1x32xf32>
    %123 = vector.shape_cast %122 : vector<1x1x32xf32> to vector<1x32xf32>
    %cst_33 = arith.constant dense<0.000000e+00> : vector<16xf32>
    %124 = vector.multi_reduction <add>, %119, %cst_33 [1] : vector<16x32xf32> to vector<16xf32>
    %125 = vector.shape_cast %124 : vector<16xf32> to vector<16x1xf32>
    %cst_34 = arith.constant 3.200000e+01 : f32
    %126 = vector.broadcast %cst_34 : f32 to vector<16x1xf32>
    %127 = arith.divf %125, %126 : vector<16x1xf32>
    %128 = vector.broadcast %127 : vector<16x1xf32> to vector<16x32xf32>
    %129 = arith.subf %119, %128 : vector<16x32xf32>
    %130 = arith.mulf %129, %129 : vector<16x32xf32>
    %cst_35 = arith.constant dense<0.000000e+00> : vector<16xf32>
    %131 = vector.multi_reduction <add>, %130, %cst_35 [1] : vector<16x32xf32> to vector<16xf32>
    %132 = vector.shape_cast %131 : vector<16xf32> to vector<16x1xf32>
    %cst_36 = arith.constant 3.200000e+01 : f32
    %133 = vector.broadcast %cst_36 : f32 to vector<16x1xf32>
    %134 = arith.divf %132, %133 : vector<16x1xf32>
    %cst_37 = arith.constant 9.99999974E-6 : f32
    %135 = vector.broadcast %cst_37 : f32 to vector<16x1xf32>
    %136 = arith.addf %134, %135 : vector<16x1xf32>
    %137 = math.rsqrt %136 : vector<16x1xf32>
    %138 = vector.broadcast %127 : vector<16x1xf32> to vector<16x32xf32>
    %139 = arith.subf %119, %138 : vector<16x32xf32>
    %140 = vector.broadcast %137 : vector<16x1xf32> to vector<16x32xf32>
    %141 = arith.mulf %139, %140 : vector<16x32xf32>
    %142 = vector.broadcast %121 : vector<1x32xf32> to vector<16x32xf32>
    %143 = arith.mulf %141, %142 : vector<16x32xf32>
    %144 = vector.broadcast %123 : vector<1x32xf32> to vector<16x32xf32>
    %145 = arith.addf %143, %144 : vector<16x32xf32>
    %146 = arith.truncf %145 : vector<16x32xf32> to vector<16x32xbf16>
    %c0_38 = arith.constant 0 : index
    %c0_39 = arith.constant 0 : index
    %c0_40 = arith.constant 0 : index
    %147 = vector.load %arg7[%c0_38, %c0_39, %c0_40] : memref<1x32x128xbf16, #tpu.memory_space<vmem>>, vector<1x32x128xbf16>
    %148 = vector.shape_cast %147 : vector<1x32x128xbf16> to vector<32x128xbf16>
    %cst_41 = arith.constant dense<0.000000e+00> : vector<16x128xf32>
    %149 = tpu.matmul %146, %148, %cst_41 {dimension_numbers = #tpu.dot_dimension_numbers<[1], [0], [0], [1], [0, 0, 1, 1], [], []>} : vector<16x32xbf16>, vector<32x128xbf16>, vector<16x128xf32> -> vector<16x128xf32>
    %c0_42 = arith.constant 0 : index
    %c0_43 = arith.constant 0 : index
    %c0_44 = arith.constant 0 : index
    %150 = vector.load %arg8[%c0_42, %c0_43, %c0_44] : memref<1x1x128xf32, #tpu.memory_space<vmem>>, vector<1x1x128xf32>
    %151 = vector.shape_cast %150 : vector<1x1x128xf32> to vector<1x128xf32>
    %152 = vector.broadcast %151 : vector<1x128xf32> to vector<16x128xf32>
    %153 = arith.addf %149, %152 : vector<16x128xf32>
    %cst_45 = arith.constant 0.000000e+00 : f32
    %154 = vector.broadcast %cst_45 : f32 to vector<16x128xf32>
    %155 = arith.maximumf %153, %154 : vector<16x128xf32>
    %156 = arith.truncf %155 : vector<16x128xf32> to vector<16x128xbf16>
    %c0_46 = arith.constant 0 : index
    %c0_47 = arith.constant 0 : index
    %c0_48 = arith.constant 0 : index
    %157 = vector.load %arg9[%c0_46, %c0_47, %c0_48] : memref<1x128x32xbf16, #tpu.memory_space<vmem>>, vector<1x128x32xbf16>
    %158 = vector.shape_cast %157 : vector<1x128x32xbf16> to vector<128x32xbf16>
    %cst_49 = arith.constant dense<0.000000e+00> : vector<16x32xf32>
    %159 = tpu.matmul %156, %158, %cst_49 {dimension_numbers = #tpu.dot_dimension_numbers<[1], [0], [0], [1], [0, 0, 1, 1], [], []>} : vector<16x128xbf16>, vector<128x32xbf16>, vector<16x32xf32> -> vector<16x32xf32>
    %c0_50 = arith.constant 0 : index
    %c0_51 = arith.constant 0 : index
    %c0_52 = arith.constant 0 : index
    %160 = vector.load %arg10[%c0_50, %c0_51, %c0_52] : memref<1x1x32xf32, #tpu.memory_space<vmem>>, vector<1x1x32xf32>
    %161 = vector.shape_cast %160 : vector<1x1x32xf32> to vector<1x32xf32>
    %162 = vector.broadcast %161 : vector<1x32xf32> to vector<16x32xf32>
    %163 = arith.addf %159, %162 : vector<16x32xf32>
    %164 = arith.addf %145, %163 : vector<16x32xf32>
    %c0_53 = arith.constant 0 : index
    %c2 = arith.constant 2 : index
    %c0_54 = arith.constant 0 : index
    %165 = vector.load %arg6[%c0_53, %c2, %c0_54] : memref<1x4x32xf32, #tpu.memory_space<vmem>>, vector<1x1x32xf32>
    %166 = vector.shape_cast %165 : vector<1x1x32xf32> to vector<1x32xf32>
    %c0_55 = arith.constant 0 : index
    %c3 = arith.constant 3 : index
    %c0_56 = arith.constant 0 : index
    %167 = vector.load %arg6[%c0_55, %c3, %c0_56] : memref<1x4x32xf32, #tpu.memory_space<vmem>>, vector<1x1x32xf32>
    %168 = vector.shape_cast %167 : vector<1x1x32xf32> to vector<1x32xf32>
    %cst_57 = arith.constant dense<0.000000e+00> : vector<16xf32>
    %169 = vector.multi_reduction <add>, %164, %cst_57 [1] : vector<16x32xf32> to vector<16xf32>
    %170 = vector.shape_cast %169 : vector<16xf32> to vector<16x1xf32>
    %cst_58 = arith.constant 3.200000e+01 : f32
    %171 = vector.broadcast %cst_58 : f32 to vector<16x1xf32>
    %172 = arith.divf %170, %171 : vector<16x1xf32>
    %173 = vector.broadcast %172 : vector<16x1xf32> to vector<16x32xf32>
    %174 = arith.subf %164, %173 : vector<16x32xf32>
    %175 = arith.mulf %174, %174 : vector<16x32xf32>
    %cst_59 = arith.constant dense<0.000000e+00> : vector<16xf32>
    %176 = vector.multi_reduction <add>, %175, %cst_59 [1] : vector<16x32xf32> to vector<16xf32>
    %177 = vector.shape_cast %176 : vector<16xf32> to vector<16x1xf32>
    %cst_60 = arith.constant 3.200000e+01 : f32
    %178 = vector.broadcast %cst_60 : f32 to vector<16x1xf32>
    %179 = arith.divf %177, %178 : vector<16x1xf32>
    %cst_61 = arith.constant 9.99999974E-6 : f32
    %180 = vector.broadcast %cst_61 : f32 to vector<16x1xf32>
    %181 = arith.addf %179, %180 : vector<16x1xf32>
    %182 = math.rsqrt %181 : vector<16x1xf32>
    %183 = vector.broadcast %172 : vector<16x1xf32> to vector<16x32xf32>
    %184 = arith.subf %164, %183 : vector<16x32xf32>
    %185 = vector.broadcast %182 : vector<16x1xf32> to vector<16x32xf32>
    %186 = arith.mulf %184, %185 : vector<16x32xf32>
    %187 = vector.broadcast %166 : vector<1x32xf32> to vector<16x32xf32>
    %188 = arith.mulf %186, %187 : vector<16x32xf32>
    %189 = vector.broadcast %168 : vector<1x32xf32> to vector<16x32xf32>
    %190 = arith.addf %188, %189 : vector<16x32xf32>
    %c0_62 = arith.constant 0 : index
    %c0_63 = arith.constant 0 : index
    %c0_64 = arith.constant 0 : index
    %191 = vector.load %arg11[%c0_62, %c0_63, %c0_64] : memref<1x16x32xf32, #tpu.memory_space<vmem>>, vector<1x16x32xf32>
    %192 = vector.shape_cast %191 : vector<1x16x32xf32> to vector<16x32xf32>
    %193 = vector.shape_cast %190 : vector<16x32xf32> to vector<1x16x32xf32>
    tpu.vector_store %arg11[%c0_62, %c0_63, %c0_64], %193 {strides = array<i32>} : memref<1x16x32xf32, #tpu.memory_space<vmem>>, vector<1x16x32xf32>,
    return
  }
  func.func @transform_0(%arg0: i32, %arg1: i32) -> (i32, i32) {
    %c0_i32 = arith.constant 0 : i32
    %c0_i32_0 = arith.constant 0 : i32
    %c0_i32_1 = arith.constant 0 : i32
    return %c0_i32, %c0_i32_0 : i32, i32
  }
  func.func @transform_1(%arg0: i32, %arg1: i32) -> (i32, i32, i32) {
    %c0_i32 = arith.constant 0 : i32
    %c0_i32_0 = arith.constant 0 : i32
    %c0_i32_1 = arith.constant 0 : i32
    return %arg0, %c0_i32, %c0_i32_0 : i32, i32, i32
  }
  func.func @transform_2(%arg0: i32, %arg1: i32) -> (i32, i32, i32) {
    %c0_i32 = arith.constant 0 : i32
    %c0_i32_0 = arith.constant 0 : i32
    %c0_i32_1 = arith.constant 0 : i32
    return %arg1, %c0_i32, %c0_i32_0 : i32, i32, i32
  }
  func.func @transform_3(%arg0: i32, %arg1: i32) -> (i32, i32, i32) {
    %c0_i32 = arith.constant 0 : i32
    %c0_i32_0 = arith.constant 0 : i32
    %c0_i32_1 = arith.constant 0 : i32
    return %arg1, %c0_i32, %c0_i32_0 : i32, i32, i32
  }
  func.func @transform_4(%arg0: i32, %arg1: i32) -> (i32, i32, i32) {
    %c0_i32 = arith.constant 0 : i32
    %c0_i32_0 = arith.constant 0 : i32
    %c0_i32_1 = arith.constant 0 : i32
    return %arg1, %c0_i32, %c0_i32_0 : i32, i32, i32
  }
  func.func @transform_5(%arg0: i32, %arg1: i32) -> (i32, i32, i32) {
    %c0_i32 = arith.constant 0 : i32
    %c0_i32_0 = arith.constant 0 : i32
    %c0_i32_1 = arith.constant 0 : i32
    return %arg1, %c0_i32, %c0_i32_0 : i32, i32, i32
  }
  func.func @transform_6(%arg0: i32, %arg1: i32) -> (i32, i32, i32) {
    %c0_i32 = arith.constant 0 : i32
    %c0_i32_0 = arith.constant 0 : i32
    %c0_i32_1 = arith.constant 0 : i32
    return %arg1, %c0_i32, %c0_i32_0 : i32, i32, i32
  }
  func.func @transform_7(%arg0: i32, %arg1: i32) -> (i32, i32, i32) {
    %c0_i32 = arith.constant 0 : i32
    %c0_i32_0 = arith.constant 0 : i32
    %c0_i32_1 = arith.constant 0 : i32
    return %arg1, %c0_i32, %c0_i32_0 : i32, i32, i32
  }
  func.func @transform_8(%arg0: i32, %arg1: i32) -> (i32, i32, i32) {
    %c0_i32 = arith.constant 0 : i32
    %c0_i32_0 = arith.constant 0 : i32
    %c0_i32_1 = arith.constant 0 : i32
    return %arg1, %c0_i32, %c0_i32_0 : i32, i32, i32
  }
  func.func @transform_9(%arg0: i32, %arg1: i32) -> (i32, i32, i32) {
    %c0_i32 = arith.constant 0 : i32
    %c0_i32_0 = arith.constant 0 : i32
    %c0_i32_1 = arith.constant 0 : i32
    return %arg0, %c0_i32, %c0_i32_0 : i32, i32, i32
  }
}

</mosaic_0001>

<bundles_post_ra>
// kernel: transformer_forward.3
= control target key start
LH: loop header
LB: loop body
LE: loop exit
PB: predicated region body
PF: predicated region fallthrough
CT: control target
= control target key end

     0   :  { %8 = vsyncpa [#allocation3], 0  ;;  %s631_s0 = inlined_call_operand.vmem [shape: f32[2,16,32], index: 0, kind: input, shape index: {}]   ;;  %s632_s1 = inlined_call_operand.vmem [shape: bf16[32,64], index: 1, kind: input, shape index: {}]   ;;  %s633_s2 = inlined_call_operand.vmem [shape: f32[1,64], index: 2, kind: input, shape index: {}]   ;;  %s634_s3 = inlined_call_operand.hbm [shape: f32[2,16,64], index: 3, kind: output, shape index: {}]  }
   0x1   :  { %10 = vsyncpa [#allocation3 + $0x1], 0  ;;  %s513_s12 = smov 0   ;;  %s515_s13 = smov 0  }
   0x2   :  { %s517_s14 = smov 0   ;;  %s519_s15 = smov 0  }
   0x3 LB: > { %s534_s16 = sadd.s32 4294967295, %s486_s15   ;;  %s342_s17 = sadd.s32 4294967294, %s486_s15   ;;  %s486_s15 = sphi %s519_s15, %s640_s15   ;;  %s482_s14 = sphi %s517_s14, %s639_s14   ;;  %s478_s13 = sphi %s515_s13, %s638_s13   ;;  %s474_s12 = sphi %s513_s12, %s637_s12  }
   0x4   : > { %s538_s18 = sadd.s32 1, %s486_s15   ;;  %s91_s19 = sadd.s32 1, %s482_s14 }
   0x5   : > { %s88_s20 = ssub.s32 %s486_s15, %s538_s18  ;;  %p101_p0 = scmp.ne.s32.totalorder %s482_s14, %s478_s13 }
   0x6   : > { %p89_p1 = scmp.eq.s32.totalorder %s88_s20, 0  ;;  %p102_p2 = scmp.eq.s32.totalorder %s534_s16, 1 }
   0x7   : > { %p107_p3 = scmp.ne.s32.totalorder %s478_s13, %s474_s12  ;;  %p108_p4 = scmp.eq.s32.totalorder %s342_s17, 1 }
   0x8   : > { %s549_s21 = scalar_select %p89_p1, %s482_s14, %s91_s19  }
   0x9   : > { %p551_p5 = por %p102_p2, %p101_p0  ;;  %p555_p6 = por %p108_p4, %p107_p3 }
   0xa   : > { %p345_p7 = scmp.ge.s32.totalorder %s486_s15, 1  ;;  %p140_p8 = scmp.lt.s32.totalorder %s486_s15, 3 }
   0xc   : > { %p141_p9 = pnand %p345_p7, %p140_p8 }
   0xd   : > { %v414_v0 = vld [vmem:[%s632_s1] sm:$0xff] (!%p141_p9)   ;;  %v488_v1 = vmov (!%p141_p9), 0.0   ;;  %v415_v2 = vld [vmem:[%s632_s1 + $0x8] sm:$0xff] (!%p141_p9)   ;;  %vm489_vm0 = vmmov (!%p141_p9), 0   ;;  %p164_p10 = scmp.lt.s32.totalorder (!%p141_p9), %s534_s16, 1  ;;  %vm196_vm1 = vcmask (!%p141_p9), 261120  }
   0xe   : > { %144 = sbr.rel (%p141_p9) target bundleno = 575 (0x23f), region = 32  ;;  %363 = vmatprep.subr.bf16.mxu0 (!%p141_p9), %v488_v1  ;;  %367 = vmatprep.mubr.msk.bf16.mxu0 (!%p141_p9), %vm489_vm0, %v488_v1  ;;  %v349_v6 = vld [vmem:[%s633_s2] ss:$0 sm:$0xff] (!%p141_p9)  ;;  %vm241_vm2 = vcmask (!%p141_p9), 523264   ;;  %s161_s8 = sand.u32 (!%p141_p9), 1, %s478_s13  }
   0xf   : > { %364 = vmatpush3.bf16.msra.mxu0 (!%p141_p9), %v414_v0  ;;  %s346_s9 = sshll.u32 (!%p141_p9), %s161_s8, 4  ;;  %s359_s10 = sshll.u32 (!%p141_p9), %s534_s16, 8 }
  0x10   : > { %365 = vmatprep.subr.bf16.mxu0 (!%p141_p9), %v488_v1  ;;  %s163_s11 = scalar_lea.vmem (!%p141_p9), [#allocation2], %s346_s9  ;;  %s585_s24 = scalar_lea.hbm (!%p141_p9), %s634_s3, %s359_s10 }
  0x11   : > { %s280_s17 = sshll.u32 (!%p141_p9), %s163_s11, 4  ;;  %s590_s25 = scalar_lea.sflag (!%p141_p9), [#allocation3], %s161_s8  ;;  %s587_s17 = int_to_ptr.vmem [resolvable:$true] %s280_s17 }
  0x12   : > { %s490_s26 = smov (!%p141_p9), [#allocation2]  }
  0x13   : > { %366 = vmatpush3.bf16.msra.mxu0 (!%p141_p9), %v415_v2  ;;  %s428_s27 = sshll.u32 (!%p141_p9), %s490_s26, 4  ;;  %s429_s27 = int_to_ptr.vmem [resolvable:$false] %s428_s27 }
  0x14   : > { %p431_p0 = scmp.lt.s32.totalorder (!%p141_p9), %s587_s17, %s429_s27 }
  0x15   : > { %s165_s28 = scalar_select %p164_p10, %s534_s16, 1 }
  0x16   : > { %s424_s16 = scalar_lea.vmem %s587_s17, 256 }
  0x17   : > { %s358_s29 = sshll.u32 %s165_s28, 4  ;;  %p425_p11 = scmp.ne.s32.totalorder %s587_s17, %s424_s16 }
  0x18   : > { %s168_s5 = scalar_lea.vmem %s631_s0, %s358_s29  ;;  %s430_s28 = scalar_lea.vmem %s429_s27, 512 }
  0x19   : > { %v170_v3 = vld [vmem:[%s168_s5] sm:$0xff]  ;;  %v171_v4 = vld [vmem:[%s168_s5 + $0x8] sm:$0xff]  ;;  %p426_p12 = pnand %p425_p11, %p551_p5  ;;  %p432_p1 = scmp.lt.s32.totalorder %s430_s28, %s424_s16 }
  0x1a   : > { %v172_v5 = vpack.c.bf16 %v171_v4, %v170_v3 }
  0x1b   : > { %p427_p13 = pneg %p426_p12  ;;  %p433_p2 = por %p432_p1, %p431_p0 }
  0x1c   : > { %368 = vmatmul.mubr.msk.bf16.vlgmr.msra.gmra.mrb[0].mxu0 %vm196_vm1, %v172_v5 }
  0x1d   : > { %p434_p3 = pnand %p433_p2, %p427_p13 }
  0xef   : > { %v234_v7 = vpop.f32.mrb[0].mxu0 }
  0xf0   : > { %v235_v8 = vadd.f32 %v349_v6, %v234_v7  ;;  %v369_v9 = vpop.f32.mrb[1].mxu0 }
  0xf1   : > { %v237_v10 = vpop.f32.mrb[2].mxu0 }
  0xf2   : > { %v238_v11 = vadd.f32 %v349_v6, %v237_v10  ;;  %v370_v12 = vpop.f32.mrb[3].mxu0  ;;  %v242_v13 = vsel %vm241_vm2, %v235_v8, -inf }
  0xf3   : > { %243 = vmax.xlane.f32.xlu0 %v242_v13 }
  0xf4   : > { %v245_v14 = vsel %vm241_vm2, %v238_v11, -inf }
  0xf7   : > { %246 = vmax.xlane.f32.xlu0 %v245_v14 }
 0x180   : > { %v244_v15 = vpop.xlane.xlu0 %243 }
 0x181   : > { %v248_v16 = vsub.f32 %v235_v8, %v244_v15 }
 0x183   : > { %v250_v17 = vmul.f32 1.442695, %v248_v16 }
 0x184   : > { %v247_v18 = vpop.xlane.xlu0 %246 }
 0x185   : > { %416 = vpow2.f32 %v250_v17  ;;  %v249_v19 = vsub.f32 %v238_v11, %v247_v18 }
 0x187   : > { %v252_v20 = vmul.f32 1.442695, %v249_v19 }
 0x189   : > { %418 = vpow2.f32 %v252_v20 }
 0x18f   : > { %v417_v21 = vpop.eup %416 }
 0x190   : > { %v254_v22 = vsel %vm241_vm2, %v417_v21, 0.0 }
 0x191   : > { %255 = vadd.xlane.f32.xlu1 %v254_v22 }
 0x193   : > { %v419_v23 = vpop.eup %418 }
 0x194   : > { %v257_v24 = vsel %vm241_vm2, %v419_v23, 0.0 }
 0x195   : > { %258 = vadd.xlane.f32.xlu1 %v257_v24 }
 0x21e   : > { %v256_v25 = vpop.xlane.xlu1 %255 }
 0x21f   : > { %420 = vrcp.f32 %v256_v25 }
 0x222   : > { %v259_v26 = vpop.xlane.xlu1 %258 }
 0x223   : > { %422 = vrcp.f32 %v259_v26 }
 0x229   : > { %v421_v27 = vpop.eup %420 }
 0x22a   : > { %v261_v28 = vmul.f32 %v421_v27, %v417_v21 }
 0x22c   : > { %264 = vst.msk [vmem:[%s163_s11] sm:$0xff] %vm241_vm2, %v261_v28 }
 0x22d   : > { %v423_v29 = vpop.eup %422 }
 0x22e   : > { %v263_v30 = vmul.f32 %v423_v29, %v419_v23 }
 0x230   : > { %265 = vst.msk [vmem:[%s163_s11 + $0x8] sm:$0xff] %vm241_vm2, %v263_v30 }
 0x231   : > { %437 = shalt.err (!%p434_p3)
}
 0x232   : > { %s438_s29 = scalar_lea.hbm %s585_s24, 256  ;;  %s442_s5 = scalar_lea.hbm %s634_s3, 512 }
 0x233   : > { %p439_p4 = scmp.ne.s32.totalorder %s585_s24, %s438_s29  ;;  %p443_p9 = scmp.lt.u32.totalorder %s585_s24, %s634_s3 }
 0x234   : > { %p444_p10 = scmp.lt.u32.totalorder %s442_s5, %s438_s29  ;;  %p446_p12 = scmp.lt.u32.totalorder %s438_s29, %s585_s24 }
 0x235   : > { %p440_p7 = pnand %p439_p4, %p551_p5 }
 0x236   : > { %p445_p11 = por %p444_p10, %p443_p9 }
 0x237   : > { %p441_p8 = pneg %p440_p7 }
 0x238   : > { %p447_p13 = por %p446_p12, %p445_p11 }
 0x23a   : > { %p448_p0 = pnand %p447_p13, %p441_p8 }
 0x23c   : > { %451 = shalt.err (!%p448_p0)
}
 0x23d   : > { %s491_s8 = smov 128   ;;  %s492_s9 = smov 8  }
 0x23e   : > { %371 = dma.vmem_to_hbm [thread:$0]  (%p551_p5), %s587_s17, 256, %s585_s24, %s590_s25, %s491_s8, %s491_s8, %s492_s9  }
 0x23f PF: > { %p377_p1 = scmp.ge.s32.totalorder %s486_s15, 2  ;;  %s295_s10 = sand.u32 1, %s474_s12  }
 0x240   : > { %s296_s11 = scalar_lea.sflag [#allocation3], %s295_s10 }
 0x241   : > { %p374_p2 = pnand %p377_p1, %p555_p6 }
 0x243   : > { %469 = dma.done.wait (!%p374_p2), %s296_s11, 256  }
 0x244   : > { %471 = vsyncadd (!%p374_p2), %s296_s11, 4294967040  ;;  %p13_p3 = scmp.ge.s32.totalorder %s538_s18, 4   ;;  %s637_s12 = smov %s478_s13 }
 0x245   : > { %s638_s13 = smov %s482_s14  ;;  %s639_s14 = smov %s549_s21 }
 0x246   : > { %s640_s15 = smov %s538_s18  ;;  %15 = sbr.rel (!%p13_p3) target bundleno = 3 (0x3), region = 67 }
 0x24d   :  { %301 = vsyncpa [#allocation3], 1 }
 0x24e   :  { %303 = vsyncpa [#allocation3 + $0x1], 1 }

// kernel: transformer_forward.2
= control target key start
LH: loop header
LB: loop body
LE: loop exit
PB: predicated region body
PF: predicated region fallthrough
CT: control target
= control target key end

     0   :  { %s2309_s30 = smov 0   ;;  %s2311_s10 = smov 0   ;;  %s2644_s0 = inlined_call_operand.vmem [shape: f32[8,8], index: 0, kind: input, shape index: {}]   ;;  %s2645_s1 = inlined_call_operand.vmem [shape: f32[2,16,32], index: 1, kind: input, shape index: {}]   ;;  %s2646_s2 = inlined_call_operand.vmem [shape: bf16[2,32,192], index: 2, kind: input, shape index: {}]   ;;  %s2647_s3 = inlined_call_operand.vmem [shape: f32[2,1,192], index: 3, kind: input, shape index: {}]   ;;  %s2648_s4 = inlined_call_operand.vmem [shape: f32[2,4,32], index: 4, kind: input, shape index: {}]   ;;  %s2649_s5 = inlined_call_operand.vmem [shape: bf16[2,32,128], index: 5, kind: input, shape index: {}]   ;;  %s2650_s6 = inlined_call_operand.vmem [shape: f32[2,1,128], index: 6, kind: input, shape index: {}]   ;;  %s2651_s7 = inlined_call_operand.vmem [shape: bf16[2,128,32], index: 7, kind: input, shape index: {}]   ;;  %s2652_s8 = inlined_call_operand.vmem [shape: f32[2,1,32], index: 8, kind: input, shape index: {}]   ;;  %s2653_s9 = inlined_call_operand.vmem [shape: f32[2,16,32], index: 9, kind: output, shape index: {}]  }
   0x1   :  { %2656 = sst [smem:[#allocation6_spill]] %s2645_s1  ;;  %s2313_s11 = smov 0  }
   0x2   :  { %2657 = sst [smem:[#allocation7_spill]] %s2646_s2  ;;  %s2315_s12 = smov 0  }
   0x3   :  { %2658 = sst [smem:[#allocation8_spill]] %s2647_s3  ;;  %s2317_s13 = smov 0  }
   0x4 LB: > { %2659 = sst [smem:[#allocation2_spill]] %s2237_s11  ;;  %s28_s14 = sadd.s32 1, %s2237_s11  ;;  %s2245_s13 = sphi %s2317_s13, %s19_s13   ;;  %s2241_s12 = sphi %s2315_s12, %s2669_s12   ;;  %s2237_s11 = sphi %s2313_s11, %s2668_s11   ;;  %s2233_s10 = sphi %s2311_s10, %s2667_s10   ;;  %s2229_s30 = sphi %s2309_s30, %s2666_s30  }
   0x5   : > { %2660 = sst [smem:[#allocation3_spill]] %s2241_s12  ;;  %s31_s15 = sadd.s32 1, %s2241_s12 }
   0x6   : > { %p29_p0 = scmp.ge.s32.totalorder %s28_s14, 2  ;;  %p1872_p1 = scmp.ge.s32.totalorder %s2245_s13, 1 }
   0x7   : > { %p363_p2 = scmp.lt.s32.totalorder %s2245_s13, 5 }
   0x8   : > { %s2671_s14 = smov (%p29_p0, %s28_s14), 0  ;;  %s2673_s15 = smov (!%p29_p0, %s31_s15), %s2241_s12 }
   0x9   : > { %2661 = sst [smem:[#allocation4_spill]] %s2671_s14  ;;  %p364_p3 = pnand %p1872_p1, %p363_p2 }
   0xa   : > { %p33_p4 = scmp.ge.s32.totalorder %s2673_s15, 2  ;;  %p428_p5 = scmp.lt.s32.totalorder (!%p364_p3), %s2233_s10, 1 }
   0xb   : > { %367 = sbr.rel (%p364_p3) target bundleno = 3818 (0xeea), region = 56  ;;  %p433_p6 = scmp.lt.s32.totalorder (!%p364_p3), %s2229_s30, 1 }
   0xc   : > { %s2675_s15 = smov (%p33_p4, %s2673_s15), 0  ;;  %s2663_s1 = sld [smem:[#allocation6_spill]] (!%p364_p3) }
   0xd   : > { %2662 = sst [smem:[#allocation5_spill]] %s2675_s15  ;;  %s2664_s2 = sld [smem:[#allocation7_spill]] (!%p364_p3) }
   0xe   : > { %s2665_s3 = sld [smem:[#allocation8_spill]] (!%p364_p3)  ;;  %p1885_p7 = scmp.ne.s32.totalorder (!%p364_p3), %s2229_s30, 0 }
  0x12   : > { %s2677_s10 = smov (!%p428_p5, %s2233_s10), 1  ;;  %vm474_vm0 = vcmask (!%p1885_p7), 261120  }
  0x13   : > { %s2343_s16 = scalar_select %p433_p6, %s2229_s30, 1 }
  0x14   : > { %s1926_s17 = sshll.u32 %s2677_s10, 4 }
  0x15   : > { %s432_s20 = scalar_lea.vmem %s2663_s1, %s1926_s17  ;;  %s1927_s21 = sshll.u32 %s2343_s16, 5 }
  0x16   : > { %s437_s24 = scalar_lea.vmem %s2664_s2, %s1927_s21  ;;  %s1877_s25 = sshll.u32 %s2343_s16, 1  ;;  %v472_v0 = vld [vmem:[%s432_s20] sm:$0xff] (!%p1885_p7)  ;;  %v473_v1 = vld [vmem:[%s432_s20 + $0x8] sm:$0xff] (!%p1885_p7) }
  0x17   : > { %s2356_s28 = scalar_lea.vmem %s2665_s3, %s1877_s25  ;;  %s1878_s29 = sshll.u32 %s2343_s16, 2 }
  0x18   : > { %s2362_s10 = scalar_lea.vmem %s2648_s4, %s1878_s29  ;;  %s1928_s12 = sshll.u32 %s2343_s16, 4 }
  0x19   : > { %s2368_s1 = scalar_lea.vmem %s2649_s5, %s1928_s12  ;;  %s453_s23 = scalar_lea.vmem %s2650_s6, %s2343_s16 }
  0x1a   : > { %s1929_s2 = sshll.u32 %s2343_s16, 6  ;;  %s461_s27 = scalar_lea.vmem %s2652_s8, %s2343_s16 }
  0x1b   : > { %s2382_s14 = scalar_lea.vmem %s2651_s7, %s1929_s2  ;;  %s2387_s18 = scalar_lea.vmem %s2653_s9, %s1926_s17 }
  0x1c   : > { %471 = sbr.rel (%p1885_p7) target bundleno = 35 (0x23), region = 60  ;;  %475 = vst.msk [vmem:[%s2387_s18] sm:$0xff] (!%p1885_p7), %vm474_vm0, %v472_v0  ;;  %476 = vst.msk [vmem:[%s2387_s18 + $0x8] sm:$0xff] (!%p1885_p7), %vm474_vm0, %v473_v1 }
  0x23 PF: > { %v2151_v2 = vld [vmem:[%s437_s24 + $0x4] ss:$8 sps:$4 sm:$0xff]   ;;  %v2153_v3 = vld [vmem:[%s437_s24] ss:$8 sps:$4 sm:$0xff]   ;;  %v2247_v4 = vmov 0   ;;  %vm517_vm1 = vcmask 261120   ;;  %v487_v10 = vlaneseq }
  0x24   : > { %553 = vmatprep.mubr.bf16.mxu1 %v2247_v4  ;;  %521 = vmatprep.subr.bf16.mxu1 %v2151_v2  ;;  %v2154_v5 = vld [vmem:[%s437_s24 + $0x14] ss:$8 sps:$4 sm:$0xff]   ;;  %v2156_v6 = vld [vmem:[%s437_s24 + $0x10] ss:$8 sps:$4 sm:$0xff]   ;;  %v2393_v7 = vld [vmem:[%s2387_s18] sm:$0xff]  ;;  %v2248_v12 = vmov 0.0  }
  0x25   : > { %522 = vmatpush1.bf16.msra.mxu1 %v2153_v3  ;;  %v2396_v8 = vld [vmem:[%s2387_s18 + $0x8] sm:$0xff]  ;;  %v2401_v11 = vshrl.u32 %v487_v10, 7  ;;  %1993 = vmatprep.subr.bf16.mxu0 %v2248_v12  ;;  %v2407_v14 = vld [vmem:[%s2356_s28] sm:$0x3]  ;;  %vm2249_vm2 = vmmov 0   ;;  %s2250_s2 = smov 96  }
  0x26   : > { %523 = vmatprep.subr.bf16.mxu1 %v2154_v5  ;;  %v480_v9 = vpack.c.bf16 %v2396_v8, %v2393_v7  ;;  %1995 = vmatprep.mubr.msk.bf16.mxu0 %vm2249_vm2, %v2248_v12  ;;  %vm569_vm3 = vcmask 64512   ;;  %v2441_v28 = vld [vmem:[%s2644_s0] sm:$0xff]  ;;  %s2251_s11 = smov 64   ;;  %s2252_s12 = smov 88   ;;  %vm694_vm4 = vcmask 1043456  }
  0x27   : > { %v489_v13 = vsub.s32 0, %v2401_v11  ;;  %s2253_s17 = smov 120   ;;  %s2254_s20 = smov 32  }
  0x28   : > { %s2255_s24 = smov 80   ;;  %s2256_s28 = smov 112  }
  0x29   : > { %524 = vmatpush1.bf16.msra.mxu1 %v2156_v6  ;;  %v490_v15 = vrot.slane %v2407_v14, %v489_v13  ;;  %s2257_s19 = smov 72   ;;  %s2258_s22 = smov 104  }
  0x2a   : > { %1975 = vmatprep.subr.bf16.mxu1 %v2248_v12 }
  0x2c   : > { %1890 = vmatmul.mubr.msk.bf16.vlgmr.msra.gmra.mrb[0].mxu1 %vm517_vm1, %v480_v9 }
  0x2d   : > { %1977 = vmatprep.mubr.msk.bf16.mxu1 %vm2249_vm2, %v2248_v12 }
  0xff   : > { %v555_v16 = vpop.f32.mrb[0].mxu1 }
 0x100   : > { %v556_v17 = vadd.f32 %v555_v16, %v490_v15  ;;  %v2414_v18 = vpop.f32.mrb[1].mxu1 }
 0x101   : > { %v559_v19 = vpop.f32.mrb[2].mxu1 }
 0x102   : > { %v2416_v20 = vpack.c.bf16 %v556_v17, %v556_v17  ;;  %v560_v21 = vadd.f32 %v559_v19, %v490_v15  ;;  %v2418_v22 = vpop.f32.mrb[3].mxu1 }
 0x104   : > { %567 = vrot.lane.b32.xlu0 %v2416_v20, %s2250_s2  ;;  %v2422_v23 = vpack.c.bf16 %v560_v21, %v560_v21 }
 0x108   : > { %617 = vrot.lane.b32.xlu0 %v2422_v23, %s2250_s2 }
 0x176   : > { %v568_v24 = vpop.permute.xlu0 %567 }
 0x177   : > { %v574_v25 = vsel %vm569_vm3, %v568_v24, 0 }
 0x178   : > { %1976 = vmatpush3.bf16.xpose.msra.mxu1 %v574_v25 }
 0x179   : > { %1981 = vmatprep.subr.bf16.mxu1 %v2248_v12 }
 0x17a   : > { %v618_v26 = vpop.permute.xlu0 %617 }
 0x17b   : > { %v623_v27 = vsel %vm569_vm3, %v618_v26, 0 }
 0x17f   : > { %1978 = vmatmul.mubr.msk.bf16.vlgmr.msra.gmra.mrb[4].mxu1 %vm569_vm3, %v2416_v20 }
 0x180   : > { %1982 = vmatpush3.bf16.xpose.msra.mxu1 %v623_v27  ;;  %1983 = vmatprep.mubr.msk.bf16.mxu1 %vm2249_vm2, %v2248_v12 }
 0x181   : > { %1987 = vmatprep.subr.bf16.mxu1 %v2248_v12 }
 0x187   : > { %1984 = vmatmul.mubr.msk.bf16.vlgmr.msra.gmra.mrb[8].mxu1 %vm569_vm3, %v2422_v23 }
 0x188   : > { %1989 = vmatprep.mubr.msk.bf16.mxu1 %vm2249_vm2, %v2248_v12 }
 0x252   : > { %v610_v29 = vpop.f32.mrb[4].mxu1 }
 0x253   : > { %v611_v30 = vadd.f32 %v610_v29, %v2441_v28  ;;  %v1979_v31 = vpop.f32.mrb[5].mxu1 }
 0x254   : > { %v613_v32 = vpop.f32.mrb[6].mxu1 }
 0x255   : > { %v1980_v33 = vpop.f32.mrb[7].mxu1  ;;  %v665_v34 = vsel %vm569_vm3, %v611_v30, -inf }
 0x256   : > { %666 = vmax.xlane.f32.xlu1 %v665_v34 }
 0x25a   : > { %v659_v35 = vpop.f32.mrb[8].mxu1 }
 0x25b   : > { %v660_v36 = vadd.f32 %v659_v35, %v2441_v28  ;;  %v1985_v37 = vpop.f32.mrb[9].mxu1 }
 0x25c   : > { %v662_v38 = vpop.f32.mrb[10].mxu1 }
 0x25d   : > { %v1986_v39 = vpop.f32.mrb[11].mxu1  ;;  %v668_v40 = vsel %vm569_vm3, %v660_v36, -inf }
 0x25e   : > { %669 = vmax.xlane.f32.xlu1 %v668_v40 }
 0x26f   : > { %689 = vrot.lane.b32.xlu1 %v2416_v20, %s2251_s11 }
 0x273   : > { %738 = vrot.lane.b32.xlu1 %v2422_v23, %s2251_s11 }
 0x277   : > { %790 = vrot.lane.b32.xlu1 %v2416_v20, %s2252_s12 }
 0x2e3   : > { %v667_v41 = vpop.xlane.xlu1 %666 }
 0x2e4   : > { %v671_v42 = vsub.f32 %v611_v30, %v667_v41 }
 0x2e6   : > { %v673_v43 = vmul.f32 1.442695, %v671_v42 }
 0x2e8   : > { %2167 = vpow2.f32 %v673_v43 }
 0x2eb   : > { %v670_v44 = vpop.xlane.xlu1 %669 }
 0x2ec   : > { %v672_v45 = vsub.f32 %v660_v36, %v670_v44 }
 0x2ee   : > { %v675_v46 = vmul.f32 1.442695, %v672_v45 }
 0x2ef   : > { %v690_v47 = vpop.permute.xlu1 %689 }
 0x2f0   : > { %2169 = vpow2.f32 %v675_v46  ;;  %v696_v48 = vsel %vm694_vm4, %v690_v47, 0 }
 0x2f1   : > { %1988 = vmatpush3.bf16.msra.mxu1 %v696_v48 }
 0x2f2   : > { %v2168_v49 = vpop.eup %2167  ;;  %1999 = vmatprep.subr.bf16.mxu1 %v2248_v12 }
 0x2f3   : > { %v739_v50 = vpop.permute.xlu1 %738  ;;  %v677_v51 = vsel %vm569_vm3, %v2168_v49, 0.0 }
 0x2f4   : > { %678 = vadd.xlane.f32.xlu0 %v677_v51  ;;  %v744_v52 = vsel %vm694_vm4, %v739_v50, 0  ;;  %v493_v51 = vsub.s32 1, %v2401_v11 }
 0x2f5   : > { %1994 = vmatpush3.bf16.msra.mxu0 %v744_v52 }
 0x2f6   : > { %2005 = vmatprep.subr.bf16.mxu0 %v2248_v12 }
 0x2f7   : > { %v791_v56 = vpop.permute.xlu1 %790 }
 0x2f8   : > { %v796_v61 = vsel %vm569_vm3, %v791_v56, 0 }
 0x2fa   : > { %v2170_v53 = vpop.eup %2169 }
 0x2fb   : > { %v680_v54 = vsel %vm569_vm3, %v2170_v53, 0.0 }
 0x2fc   : > { %681 = vadd.xlane.f32.xlu1 %v680_v54  ;;  %v494_v54 = vrot.slane %v2407_v14, %v493_v51 }
 0x30a   : > { %788 = vrot.lane.b32.xlu0 %v2416_v20, %s2253_s17 }
 0x30d   : > { %840 = vrot.lane.b32.xlu1 %v2422_v23, %s2252_s12 }
 0x311   : > { %838 = vrot.lane.b32.xlu1 %v2422_v23, %s2253_s17 }
 0x381   : > { %v679_v55 = vpop.xlane.xlu0 %678 }
 0x382   : > { %2171 = vrcp.f32 %v679_v55 }
 0x385   : > { %v789_v2 = vpop.permute.xlu0 %788 }
 0x389   : > { %v682_v57 = vpop.xlane.xlu1 %681 }
 0x38a   : > { %2173 = vrcp.f32 %v682_v57  ;;  %v558_v57 = vadd.f32 %v2414_v18, %v494_v54 }
 0x38c   : > { %v2172_v58 = vpop.eup %2171 }
 0x38d   : > { %v684_v59 = vmul.f32 %v2172_v58, %v2168_v49  ;;  %v841_v0 = vpop.permute.xlu1 %840 }
 0x38e   : > { %v846_v3 = vsel %vm569_vm3, %v841_v0, 0 }
 0x38f   : > { %v687_v60 = vpack.c.bf16 %v684_v59, %v684_v59  ;;  %v2503_v59 = vpack.c.bf16 %v558_v57, %v558_v57 }
 0x391   : > { %1990 = vmatmul.mubr.msk.bf16.vlgmr.msra.gmra.mrb[12].mxu1 %vm569_vm3, %v687_v60  ;;  %v839_v4 = vpop.permute.xlu1 %838  ;;  %v1140_v18 = vsel %vm694_vm4, %v2503_v59, 0 }
 0x392   : > { %2000 = vmatpush3.bf16.xpose.msra.mxu1 %v796_v61  ;;  %2001 = vmatprep.mubr.msk.bf16.mxu1 %vm2249_vm2, %v2248_v12 }
 0x393   : > { %2011 = vmatprep.subr.bf16.mxu1 %v2248_v12 }
 0x394   : > { %v2174_v62 = vpop.eup %2173 }
 0x395   : > { %v686_v63 = vmul.f32 %v2174_v62, %v2170_v53 }
 0x397   : > { %v688_v1 = vpack.c.bf16 %v686_v63, %v686_v63  ;;  %v562_v63 = vadd.f32 %v2418_v22, %v494_v54 }
 0x399   : > { %1996 = vmatmul.mubr.msk.bf16.vlgmr.msra.gmra.mrb[0].mxu0 %vm569_vm3, %v688_v1  ;;  %2002 = vmatmul.mubr.msk.bf16.vlgmr.msra.gmra.mrb[16].mxu1 %vm569_vm3, %v789_v2  ;;  %v2517_v1 = vpack.c.bf16 %v562_v63, %v562_v63 }
 0x39a   : > { %2006 = vmatpush3.bf16.xpose.msra.mxu0 %v846_v3  ;;  %2007 = vmatprep.mubr.msk.bf16.mxu0 %vm2249_vm2, %v2248_v12 }
 0x39b   : > { %2017 = vmatprep.subr.bf16.mxu0 %v2248_v12  ;;  %2013 = vmatprep.mubr.msk.bf16.mxu1 %vm2249_vm2, %v2248_v12  ;;  %v1186_v2 = vsel %vm694_vm4, %v2517_v1, 0 }
 0x3a1   : > { %2008 = vmatmul.mubr.msk.bf16.vlgmr.msra.gmra.mrb[4].mxu0 %vm569_vm3, %v839_v4 }
 0x3a2   : > { %2019 = vmatprep.mubr.msk.bf16.mxu0 %vm2249_vm2, %v2248_v12 }
 0x464   : > { %v2475_v5 = vpop.f32.mrb[12].mxu1 }
 0x465   : > { %v1991_v6 = vpop.f32.mrb[13].mxu1 }
 0x466   : > { %v735_v9 = vpop.f32.mrb[14].mxu1 }
 0x467   : > { %v1992_v10 = vpop.f32.mrb[15].mxu1 }
 0x46c   : > { %v2477_v13 = vpop.f32.mrb[0].mxu0  ;;  %v832_v15 = vpop.f32.mrb[16].mxu1 }
 0x46d   : > { %v833_v16 = vadd.f32 %v832_v15, %v2441_v28  ;;  %v1997_v17 = vpop.f32.mrb[1].mxu0  ;;  %v2003_v19 = vpop.f32.mrb[17].mxu1 }
 0x46e   : > { %v783_v21 = vpop.f32.mrb[2].mxu0  ;;  %v835_v24 = vpop.f32.mrb[18].mxu1 }
 0x46f   : > { %v1998_v25 = vpop.f32.mrb[3].mxu0  ;;  %v2004_v26 = vpop.f32.mrb[19].mxu1  ;;  %v888_v27 = vsel %vm569_vm3, %v833_v16, -inf }
 0x470   : > { %889 = vmax.xlane.f32.xlu1 %v888_v27 }
 0x474   : > { %v882_v29 = vpop.f32.mrb[4].mxu0 }
 0x475   : > { %v883_v30 = vadd.f32 %v882_v29, %v2441_v28  ;;  %v2009_v31 = vpop.f32.mrb[5].mxu0 }
 0x476   : > { %v885_v32 = vpop.f32.mrb[6].mxu0 }
 0x477   : > { %v2010_v33 = vpop.f32.mrb[7].mxu0  ;;  %v891_v34 = vsel %vm569_vm3, %v883_v30, -inf }
 0x478   : > { %892 = vmax.xlane.f32.xlu0 %v891_v34 }
 0x481   : > { %912 = vrot.lane.b32.xlu1 %v2416_v20, %s2254_s20 }
 0x485   : > { %1014 = vrot.lane.b32.xlu1 %v2416_v20, %s2255_s24 }
 0x48e   : > { %960 = vrot.lane.b32.xlu0 %v2422_v23, %s2254_s20 }
 0x492   : > { %1012 = vrot.lane.b32.xlu0 %v2416_v20, %s2256_s28 }
 0x4fd   : > { %v890_v35 = vpop.xlane.xlu1 %889 }
 0x4fe   : > { %v894_v36 = vsub.f32 %v833_v16, %v890_v35 }
 0x500   : > { %v896_v37 = vmul.f32 1.442695, %v894_v36 }
 0x501   : > { %v913_v38 = vpop.permute.xlu1 %912 }
 0x502   : > { %2175 = vpow2.f32 %v896_v37  ;;  %v918_v39 = vsel %vm694_vm4, %v913_v38, 0 }
 0x503   : > { %2012 = vmatpush3.bf16.msra.mxu1 %v918_v39 }
 0x504   : > { %2023 = vmatprep.subr.bf16.mxu1 %v2248_v12 }
 0x505   : > { %v893_v40 = vpop.xlane.xlu0 %892  ;;  %v1015_v49 = vpop.permute.xlu1 %1014 }
 0x506   : > { %v895_v41 = vsub.f32 %v883_v30, %v893_v40  ;;  %v1020_v58 = vsel %vm569_vm3, %v1015_v49, 0 }
 0x508   : > { %v898_v42 = vmul.f32 1.442695, %v895_v41 }
 0x509   : > { %v961_v43 = vpop.permute.xlu0 %960 }
 0x50a   : > { %2177 = vpow2.f32 %v898_v42  ;;  %v966_v44 = vsel %vm694_vm4, %v961_v43, 0 }
 0x50b   : > { %2018 = vmatpush3.bf16.msra.mxu0 %v966_v44 }
 0x50c   : > { %v2176_v45 = vpop.eup %2175  ;;  %2029 = vmatprep.subr.bf16.mxu0 %v2248_v12 }
 0x50d   : > { %v900_v46 = vsel %vm569_vm3, %v2176_v45, 0.0  ;;  %v1013_v62 = vpop.permute.xlu0 %1012 }
 0x50e   : > { %901 = vadd.xlane.f32.xlu1 %v900_v46 }
 0x514   : > { %v2178_v47 = vpop.eup %2177 }
 0x515   : > { %v903_v48 = vsel %vm569_vm3, %v2178_v47, 0.0 }
 0x516   : > { %904 = vadd.xlane.f32.xlu1 %v903_v48 }
 0x527   : > { %1064 = vrot.lane.b32.xlu1 %v2422_v23, %s2255_s24 }
 0x52b   : > { %1062 = vrot.lane.b32.xlu1 %v2422_v23, %s2256_s28 }
 0x59b   : > { %v902_v50 = vpop.xlane.xlu1 %901 }
 0x59c   : > { %2179 = vrcp.f32 %v902_v50 }
 0x5a3   : > { %v905_v52 = vpop.xlane.xlu1 %904 }
 0x5a4   : > { %2181 = vrcp.f32 %v905_v52 }
 0x5a6   : > { %v2180_v53 = vpop.eup %2179 }
 0x5a7   : > { %v907_v55 = vmul.f32 %v2180_v53, %v2176_v45  ;;  %v1065_v61 = vpop.permute.xlu1 %1064 }
 0x5a8   : > { %v1070_v0 = vsel %vm569_vm3, %v1065_v61, 0 }
 0x5a9   : > { %v910_v56 = vpack.c.bf16 %v907_v55, %v907_v55 }
 0x5ab   : > { %2014 = vmatmul.mubr.msk.bf16.vlgmr.msra.gmra.mrb[20].mxu1 %vm569_vm3, %v910_v56  ;;  %v1063_v22 = vpop.permute.xlu1 %1062 }
 0x5ac   : > { %2024 = vmatpush3.bf16.xpose.msra.mxu1 %v1020_v58  ;;  %2025 = vmatprep.mubr.msk.bf16.mxu1 %vm2249_vm2, %v2248_v12 }
 0x5ad   : > { %2035 = vmatprep.subr.bf16.mxu1 %v2248_v12 }
 0x5ae   : > { %v2182_v11 = vpop.eup %2181 }
 0x5af   : > { %v909_v60 = vmul.f32 %v2182_v11, %v2178_v47 }
 0x5b1   : > { %v911_v14 = vpack.c.bf16 %v909_v60, %v909_v60 }
 0x5b3   : > { %2020 = vmatmul.mubr.msk.bf16.vlgmr.msra.gmra.mrb[8].mxu0 %vm569_vm3, %v911_v14  ;;  %2026 = vmatmul.mubr.msk.bf16.vlgmr.msra.gmra.mrb[24].mxu1 %vm569_vm3, %v1013_v62 }
 0x5b4   : > { %2030 = vmatpush3.bf16.xpose.msra.mxu0 %v1070_v0  ;;  %2036 = vmatpush3.bf16.msra.mxu1 %v1140_v18 }
 0x5b5   : > { %2031 = vmatprep.mubr.msk.bf16.mxu0 %vm2249_vm2, %v2248_v12  ;;  %2041 = vmatprep.subr.bf16.mxu0 %v2248_v12 }
 0x5b6   : > { %2037 = vmatprep.mubr.msk.bf16.mxu1 %vm2249_vm2, %v2248_v12  ;;  %2047 = vmatprep.subr.bf16.mxu1 %v2248_v12 }
 0x5bb   : > { %2032 = vmatmul.mubr.msk.bf16.vlgmr.msra.gmra.mrb[12].mxu0 %vm569_vm3, %v1063_v22 }
 0x5bc   : > { %2042 = vmatpush3.bf16.msra.mxu0 %v1186_v2  ;;  %2043 = vmatprep.mubr.msk.bf16.mxu0 %vm2249_vm2, %v2248_v12 }
 0x5bd   : > { %2053 = vmatprep.subr.bf16.mxu0 %v2248_v12 }
 0x67e   : > { %v954_v3 = vpop.f32.mrb[20].mxu1 }
 0x67f   : > { %v2526_v4 = vadd.f32 %v954_v3, %v2475_v5  ;;  %v2015_v6 = vpop.f32.mrb[21].mxu1 }
 0x680   : > { %v957_v9 = vpop.f32.mrb[22].mxu1 }
 0x681   : > { %v2016_v10 = vpop.f32.mrb[23].mxu1 }
 0x686   : > { %v1002_v15 = vpop.f32.mrb[8].mxu0  ;;  %v1056_v16 = vpop.f32.mrb[24].mxu1 }
 0x687   : > { %v2529_v17 = vadd.f32 %v1002_v15, %v2477_v13  ;;  %v1057_v19 = vadd.f32 %v1056_v16, %v2441_v28  ;;  %v2021_v21 = vpop.f32.mrb[9].mxu0  ;;  %v2027_v24 = vpop.f32.mrb[25].mxu1 }
 0x688   : > { %v1005_v25 = vpop.f32.mrb[10].mxu0  ;;  %v1059_v26 = vpop.f32.mrb[26].mxu1 }
 0x689   : > { %v2022_v27 = vpop.f32.mrb[11].mxu0  ;;  %v2028_v29 = vpop.f32.mrb[27].mxu1  ;;  %v1112_v30 = vsel %vm569_vm3, %v1057_v19, -inf }
 0x68a   : > { %1113 = vmax.xlane.f32.xlu0 %v1112_v30 }
 0x68e   : > { %v1106_v5 = vpop.f32.mrb[12].mxu0 }
 0x68f   : > { %v1107_v31 = vadd.f32 %v1106_v5, %v2441_v28  ;;  %v2033_v32 = vpop.f32.mrb[13].mxu0 }
 0x690   : > { %v1109_v33 = vpop.f32.mrb[14].mxu0 }
 0x691   : > { %v2034_v34 = vpop.f32.mrb[15].mxu0  ;;  %v1115_v13 = vsel %vm569_vm3, %v1107_v31, -inf }
 0x692   : > { %1116 = vmax.xlane.f32.xlu1 %v1115_v13 }
 0x6a3   : > { %1232 = vrot.lane.b32.xlu1 %v2416_v20, %s2257_s19 }
 0x6a7   : > { %1230 = vrot.lane.b32.xlu1 %v2416_v20, %s2258_s22 }
 0x6ab   : > { %1280 = vrot.lane.b32.xlu1 %v2422_v23, %s2258_s22 }
 0x717   : > { %v1114_v35 = vpop.xlane.xlu0 %1113 }
 0x718   : > { %v1118_v36 = vsub.f32 %v1057_v19, %v1114_v35 }
 0x71a   : > { %v1120_v37 = vmul.f32 1.442695, %v1118_v36 }
 0x71c   : > { %2183 = vpow2.f32 %v1120_v37 }
 0x71f   : > { %v1117_v38 = vpop.xlane.xlu1 %1116 }
 0x720   : > { %v1119_v39 = vsub.f32 %v1107_v31, %v1117_v38 }
 0x722   : > { %v1122_v40 = vmul.f32 1.442695, %v1119_v39 }
 0x723   : > { %v1233_v48 = vpop.permute.xlu1 %1232 }
 0x724   : > { %2185 = vpow2.f32 %v1122_v40  ;;  %v1238_v50 = vsel %vm569_vm3, %v1233_v48, 0 }
 0x726   : > { %v2184_v41 = vpop.eup %2183 }
 0x727   : > { %v1124_v42 = vsel %vm569_vm3, %v2184_v41, 0.0  ;;  %v1231_v54 = vpop.permute.xlu1 %1230 }
 0x728   : > { %1125 = vadd.xlane.f32.xlu0 %v1124_v42 }
 0x72b   : > { %v1281_v56 = vpop.permute.xlu1 %1280 }
 0x72e   : > { %v2186_v43 = vpop.eup %2185 }
 0x72f   : > { %v1127_v44 = vsel %vm569_vm3, %v2186_v43, 0.0 }
 0x730   : > { %1128 = vadd.xlane.f32.xlu0 %v1127_v44 }
 0x746   : > { %1282 = vrot.lane.b32.xlu0 %v2422_v23, %s2257_s19 }
 0x7b5   : > { %v1126_v20 = vpop.xlane.xlu0 %1125 }
 0x7b6   : > { %2187 = vrcp.f32 %v1126_v20 }
 0x7bd   : > { %v1129_v45 = vpop.xlane.xlu0 %1128 }
 0x7be   : > { %2189 = vrcp.f32 %v1129_v45 }
 0x7c0   : > { %v2188_v46 = vpop.eup %2187 }
 0x7c1   : > { %v1131_v47 = vmul.f32 %v2188_v46, %v2184_v41  ;;  %v1283_v52 = vpop.permute.xlu0 %1282 }
 0x7c2   : > { %v1288_v55 = vsel %vm569_vm3, %v1283_v52, 0 }
 0x7c3   : > { %v1134_v49 = vpack.c.bf16 %v1131_v47, %v1131_v47 }
 0x7c5   : > { %2038 = vmatmul.mubr.msk.bf16.vlgmr.msra.gmra.mrb[28].mxu1 %vm569_vm3, %v1134_v49 }
 0x7c6   : > { %2048 = vmatpush3.bf16.xpose.msra.mxu1 %v1238_v50  ;;  %2049 = vmatprep.mubr.msk.bf16.mxu1 %vm2249_vm2, %v2248_v12 }
 0x7c7   : > { %2059 = vmatprep.subr.bf16.mxu1 %v2248_v12 }
 0x7c8   : > { %v2190_v51 = vpop.eup %2189 }
 0x7c9   : > { %v1133_v23 = vmul.f32 %v2190_v51, %v2186_v43 }
 0x7cb   : > { %v1135_v53 = vpack.c.bf16 %v1133_v23, %v1133_v23 }
 0x7cd   : > { %2044 = vmatmul.mubr.msk.bf16.vlgmr.msra.gmra.mrb[16].mxu0 %vm569_vm3, %v1135_v53  ;;  %2050 = vmatmul.mubr.msk.bf16.vlgmr.msra.gmra.mrb[32].mxu1 %vm569_vm3, %v1231_v54 }
 0x7ce   : > { %2054 = vmatpush3.bf16.xpose.msra.mxu0 %v1288_v55  ;;  %2055 = vmatprep.mubr.msk.bf16.mxu0 %vm2249_vm2, %v2248_v12 }
 0x7cf   : > { %2065 = vmatprep.subr.bf16.mxu0 %v2248_v12  ;;  %2061 = vmatprep.mubr.msk.bf16.mxu1 %vm2249_vm2, %v2248_v12 }
 0x7d5   : > { %2056 = vmatmul.mubr.msk.bf16.vlgmr.msra.gmra.mrb[20].mxu0 %vm569_vm3, %v1281_v56 }
 0x7d6   : > { %2067 = vmatprep.mubr.msk.bf16.mxu0 %vm2249_vm2, %v2248_v12 }
 0x898   : > { %v1176_v57 = vpop.f32.mrb[28].mxu1 }
 0x899   : > { %v1228_v58 = vadd.f32 %v1176_v57, %v2526_v4  ;;  %v2039_v11 = vpop.f32.mrb[29].mxu1 }
 0x89a   : > { %v1179_v60 = vpop.f32.mrb[30].mxu1 }
 0x89b   : > { %v2040_v61 = vpop.f32.mrb[31].mxu1 }
 0x8a0   : > { %v1222_v14 = vpop.f32.mrb[16].mxu0  ;;  %v1274_v62 = vpop.f32.mrb[32].mxu1 }
 0x8a1   : > { %v2559_v18 = vadd.f32 %v1222_v14, %v2529_v17  ;;  %v1275_v63 = vadd.f32 %v1274_v62, %v2441_v28  ;;  %v2045_v0 = vpop.f32.mrb[17].mxu0  ;;  %v2051_v22 = vpop.f32.mrb[33].mxu1  ;;  %v2157_v14 = vld [vmem:[%s2368_s1] sm:$0xff]   ;;  %v2158_v62 = vld [vmem:[%s2368_s1 + $0x8] sm:$0xff]  }
 0x8a2   : > { %v1225_v2 = vpop.f32.mrb[18].mxu0  ;;  %v1277_v3 = vpop.f32.mrb[34].mxu1  ;;  %v2161_v0 = vld [vmem:[%s2382_s14 + $0x10] sm:$0xff]   ;;  %v2162_v22 = vld [vmem:[%s2382_s14 + $0x18] sm:$0xff]  }
 0x8a3   : > { %v2046_v6 = vpop.f32.mrb[19].mxu0  ;;  %v2052_v9 = vpop.f32.mrb[35].mxu1  ;;  %v1330_v10 = vsel %vm569_vm3, %v1275_v63, -inf  ;;  %v2163_v2 = vld [vmem:[%s2382_s14 + $0x20] sm:$0xff]   ;;  %v2164_v3 = vld [vmem:[%s2382_s14 + $0x28] sm:$0xff]  }
 0x8a4   : > { %1331 = vmax.xlane.f32.xlu0 %v1330_v10 }
 0x8a8   : > { %v1324_v4 = vpop.f32.mrb[20].mxu0 }
 0x8a9   : > { %v1325_v15 = vadd.f32 %v1324_v4, %v2441_v28  ;;  %v2057_v16 = vpop.f32.mrb[21].mxu0 }
 0x8aa   : > { %v1327_v19 = vpop.f32.mrb[22].mxu0 }
 0x8ab   : > { %v2058_v21 = vpop.f32.mrb[23].mxu0  ;;  %v1333_v17 = vsel %vm569_vm3, %v1325_v15, -inf }
 0x8ac   : > { %1334 = vmax.xlane.f32.xlu1 %v1333_v17  ;;  %v1907_v17 = vld [vmem:[%s2362_s10] ss:$0 sm:$0xff] }
 0x8bd   : > { %1355 = vrot.lane.b32.xlu1 %v2503_v59, %s2250_s2 }
 0x931   : > { %v1332_v24 = vpop.xlane.xlu0 %1331 }
 0x932   : > { %v1336_v25 = vsub.f32 %v1275_v63, %v1332_v24  ;;  %v2160_v63 = vld [vmem:[%s2382_s14 + $0x8] sm:$0xff]  }
 0x934   : > { %v1338_v26 = vmul.f32 1.442695, %v1336_v25 }
 0x936   : > { %2191 = vpow2.f32 %v1338_v26 }
 0x939   : > { %v1335_v27 = vpop.xlane.xlu1 %1334 }
 0x93a   : > { %v1337_v29 = vsub.f32 %v1325_v15, %v1335_v27  ;;  %v1908_v27 = vld [vmem:[%s2362_s10 + $0x1] ss:$0 sm:$0xff] }
 0x93c   : > { %v1340_v30 = vmul.f32 1.442695, %v1337_v29 }
 0x93d   : > { %v1356_v5 = vpop.permute.xlu1 %1355 }
 0x93e   : > { %2193 = vpow2.f32 %v1340_v30  ;;  %v1361_v28 = vsel %vm694_vm4, %v1356_v5, 0 }
 0x93f   : > { %2060 = vmatpush3.bf16.msra.mxu1 %v1361_v28 }
 0x940   : > { %v2192_v31 = vpop.eup %2191  ;;  %2071 = vmatprep.subr.bf16.mxu1 %v2248_v12 }
 0x941   : > { %v1342_v32 = vsel %vm569_vm3, %v2192_v31, 0.0 }
 0x942   : > { %1343 = vadd.xlane.f32.xlu0 %v1342_v32  ;;  %v2166_v32 = vld [vmem:[%s2382_s14 + $0x38] sm:$0xff]  }
 0x948   : > { %v2194_v33 = vpop.eup %2193 }
 0x949   : > { %v1345_v59 = vsel %vm569_vm3, %v2194_v33, 0.0 }
 0x94a   : > { %1346 = vadd.xlane.f32.xlu0 %v1345_v59 }
 0x960   : > { %1404 = vrot.lane.b32.xlu0 %v2517_v1, %s2250_s2 }
 0x9cf   : > { %v1344_v34 = vpop.xlane.xlu0 %1343 }
 0x9d0   : > { %2195 = vrcp.f32 %v1344_v34 }
 0x9d7   : > { %v1347_v13 = vpop.xlane.xlu0 %1346 }
 0x9d8   : > { %2197 = vrcp.f32 %v1347_v13 }
 0x9da   : > { %v2196_v35 = vpop.eup %2195 }
 0x9db   : > { %v1349_v36 = vmul.f32 %v2196_v35, %v2192_v31  ;;  %v1405_v37 = vpop.permute.xlu0 %1404  ;;  %v2165_v31 = vld [vmem:[%s2382_s14 + $0x30] sm:$0xff]  }
 0x9dc   : > { %v1410_v38 = vsel %vm694_vm4, %v1405_v37, 0 }
 0x9dd   : > { %2066 = vmatpush3.bf16.msra.mxu0 %v1410_v38  ;;  %v1352_v39 = vpack.c.bf16 %v1349_v36, %v1349_v36 }
 0x9de   : > { %2079 = vmatprep.subr.bf16.mxu0 %v2248_v12 }
 0x9df   : > { %2062 = vmatmul.mubr.msk.bf16.vlgmr.msra.gmra.mrb[36].mxu1 %vm569_vm3, %v1352_v39 }
 0x9e0   : > { %2075 = vmatprep.mubr.msk.bf16.mxu1 %vm2249_vm2, %v2248_v12  ;;  %2072 = vmatpush3.bf16.msra.mxu1 %v2157_v14 }
 0x9e1   : > { %2073 = vmatprep.subr.bf16.mxu1 %v2248_v12 }
 0x9e2   : > { %v2198_v40 = vpop.eup %2197 }
 0x9e3   : > { %v1351_v1 = vmul.f32 %v2198_v40, %v2194_v33  ;;  %v1909_v33 = vld [vmem:[%s453_s23] ss:$0 sm:$0xff] }
 0x9e4   : > { %2074 = vmatpush3.bf16.msra.mxu1 %v2158_v62  ;;  %v1922_v62 = vld [vmem:[%s2362_s10 + $0x2] ss:$0 sm:$0xff] }
 0x9e5   : > { %v1353_v41 = vpack.c.bf16 %v1351_v1, %v1351_v1 }
 0x9e7   : > { %2068 = vmatmul.mubr.msk.bf16.vlgmr.msra.gmra.mrb[24].mxu0 %vm569_vm3, %v1353_v41 }
 0x9e8   : > { %2095 = vmatprep.mubr.msk.bf16.mxu0 %vm2249_vm2, %v2248_v12 }
 0xab2   : > { %v1397_v42 = vpop.f32.mrb[36].mxu1 }
 0xab3   : > { %v1452_v43 = vadd.f32 %v1397_v42, %v1228_v58  ;;  %v2063_v44 = vpop.f32.mrb[37].mxu1 }
 0xab4   : > { %v1400_v20 = vpop.f32.mrb[38].mxu1 }
 0xab5   : > { %v2064_v45 = vpop.f32.mrb[39].mxu1  ;;  %v1454_v46 = vadd.f32 %v1452_v43, %v2393_v7 }
 0xab7   : > { %v1458_v47 = vsel %vm517_vm1, %v1454_v46, 0.0 }
 0xab8   : > { %1459 = vadd.xlane.f32.xlu1 %v1458_v47 }
 0xaba   : > { %v1446_v48 = vpop.f32.mrb[24].mxu0 }
 0xabb   : > { %v1453_v49 = vadd.f32 %v1446_v48, %v2559_v18  ;;  %v2069_v50 = vpop.f32.mrb[25].mxu0  ;;  %v2159_v18 = vld [vmem:[%s2382_s14] sm:$0xff]  }
 0xabc   : > { %v1449_v51 = vpop.f32.mrb[26].mxu0  ;;  %2080 = vmatpush3.bf16.msra.mxu0 %v2159_v18 }
 0xabd   : > { %v2070_v23 = vpop.f32.mrb[27].mxu0  ;;  %v1455_v52 = vadd.f32 %v1453_v49, %v2396_v8  ;;  %2081 = vmatprep.subr.bf16.mxu0 %v2248_v12 }
 0xabf   : > { %v1461_v53 = vsel %vm517_vm1, %v1455_v52, 0.0 }
 0xac0   : > { %1462 = vadd.xlane.f32.xlu0 %v1461_v53  ;;  %2082 = vmatpush3.bf16.msra.mxu0 %v2160_v63 }
 0xac1   : > { %2083 = vmatprep.subr.bf16.mxu0 %v2248_v12 }
 0xac4   : > { %2084 = vmatpush3.bf16.msra.mxu0 %v2161_v0  ;;  %v1923_v0 = vld [vmem:[%s2362_s10 + $0x3] ss:$0 sm:$0xff] }
 0xac5   : > { %2085 = vmatprep.subr.bf16.mxu0 %v2248_v12 }
 0xac8   : > { %2086 = vmatpush3.bf16.msra.mxu0 %v2162_v22 }
 0xac9   : > { %2087 = vmatprep.subr.bf16.mxu0 %v2248_v12 }
 0xacc   : > { %2088 = vmatpush3.bf16.msra.mxu0 %v2163_v2 }
 0xacd   : > { %2089 = vmatprep.subr.bf16.mxu0 %v2248_v12 }
 0xad0   : > { %2090 = vmatpush3.bf16.msra.mxu0 %v2164_v3 }
 0xad1   : > { %2091 = vmatprep.subr.bf16.mxu0 %v2248_v12 }
 0xad4   : > { %2092 = vmatpush3.bf16.msra.mxu0 %v2165_v31 }
 0xad5   : > { %2093 = vmatprep.subr.bf16.mxu0 %v2248_v12  ;;  %v1913_v12 = vld [vmem:[%s461_s27] ss:$0 sm:$0xff] }
 0xad8   : > { %2094 = vmatpush3.bf16.msra.mxu0 %v2166_v32 }
 0xb45   : > { %v1460_v54 = vpop.xlane.xlu1 %1459 }
 0xb46   : > { %v1465_v55 = vmul.f32 0.03125, %v1460_v54 }
 0xb48   : > { %v1467_v7 = vsub.f32 %v1454_v46, %v1465_v55 }
 0xb4a   : > { %v1469_v56 = vmul.f32 %v1467_v7, %v1467_v7 }
 0xb4c   : > { %v1471_v57 = vsel %vm517_vm1, %v1469_v56, 0.0 }
 0xb4d   : > { %v1463_v58 = vpop.xlane.xlu0 %1462  ;;  %1472 = vadd.xlane.f32.xlu1 %v1471_v57 }
 0xb4e   : > { %v1466_v11 = vmul.f32 0.03125, %v1463_v58 }
 0xb50   : > { %v1468_v60 = vsub.f32 %v1455_v52, %v1466_v11 }
 0xb52   : > { %v1470_v61 = vmul.f32 %v1468_v60, %v1468_v60 }
 0xb54   : > { %v1474_v8 = vsel %vm517_vm1, %v1470_v61, 0.0 }
 0xb55   : > { %1475 = vadd.xlane.f32.xlu0 %v1474_v8 }
 0xbda   : > { %v1473_v6 = vpop.xlane.xlu1 %1472 }
 0xbdb   : > { %v1477_v9 = vmul.f32 0.03125, %v1473_v6 }
 0xbdd   : > { %v1479_v10 = vadd.f32 1e-05, %v1477_v9 }
 0xbdf   : > { %2199 = vrsqrt.f32 %v1479_v10 }
 0xbe2   : > { %v1476_v4 = vpop.xlane.xlu0 %1475 }
 0xbe3   : > { %v1478_v15 = vmul.f32 0.03125, %v1476_v4 }
 0xbe5   : > { %v1480_v16 = vadd.f32 1e-05, %v1478_v15 }
 0xbe7   : > { %2201 = vrsqrt.f32 %v1480_v16 }
 0xbe9   : > { %v2200_v19 = vpop.eup %2199 }
 0xbea   : > { %v1483_v21 = vmul.f32 %v2200_v19, %v1467_v7 }
 0xbec   : > { %v1489_v25 = vmul.f32 %v1907_v17, %v1483_v21 }
 0xbee   : > { %v1495_v30 = vadd.f32 %v1908_v27, %v1489_v25 }
 0xbf1   : > { %v2202_v24 = vpop.eup %2201 }
 0xbf2   : > { %v1484_v26 = vmul.f32 %v2202_v24, %v1468_v60 }
 0xbf4   : > { %v1490_v29 = vmul.f32 %v1907_v17, %v1484_v26 }
 0xbf6   : > { %v1496_v5 = vadd.f32 %v1908_v27, %v1490_v29 }
 0xbf8   : > { %v1497_v28 = vpack.c.bf16 %v1496_v5, %v1495_v30 }
 0xbfa   : > { %2076 = vmatmul.mubr.msk.bf16.vlgmr.msra.gmra.mrb[40].mxu1 %vm517_vm1, %v1497_v28 }
 0xccd   : > { %v1558_v59 = vpop.f32.mrb[40].mxu1 }
 0xcce   : > { %v1559_v34 = vadd.f32 %v1909_v33, %v1558_v59  ;;  %v2077_v13 = vpop.f32.mrb[41].mxu1 }
 0xccf   : > { %v1561_v35 = vpop.f32.mrb[42].mxu1 }
 0xcd0   : > { %v1562_v36 = vadd.f32 %v1909_v33, %v1561_v35  ;;  %v2078_v37 = vpop.f32.mrb[43].mxu1  ;;  %v1565_v38 = vmax.f32 %v1559_v34, 0.0 }
 0xcd2   : > { %v1566_v39 = vmax.f32 %v1562_v36, 0.0 }
 0xcd4   : > { %v1567_v40 = vpack.c.bf16 %v1566_v39, %v1565_v38 }
 0xcd6   : > { %2096 = vmatmul.mubr.bf16.vlgmr.msra.gmra.mrb[28].mxu0 %v1567_v40 }
 0xda9   : > { %v1673_v1 = vpop.f32.mrb[28].mxu0 }
 0xdaa   : > { %v1674_v41 = vadd.f32 %v1913_v12, %v1673_v1  ;;  %v2097_v42 = vpop.f32.mrb[29].mxu0 }
 0xdab   : > { %v1676_v43 = vpop.f32.mrb[30].mxu0 }
 0xdac   : > { %v1677_v44 = vadd.f32 %v1913_v12, %v1676_v43  ;;  %v2098_v20 = vpop.f32.mrb[31].mxu0  ;;  %v1680_v45 = vadd.f32 %v1674_v41, %v1495_v30 }
 0xdae   : > { %v1684_v46 = vsel %vm517_vm1, %v1680_v45, 0.0  ;;  %v1681_v47 = vadd.f32 %v1677_v44, %v1496_v5 }
 0xdaf   : > { %1685 = vadd.xlane.f32.xlu1 %v1684_v46 }
 0xdb0   : > { %v1687_v48 = vsel %vm517_vm1, %v1681_v47, 0.0 }
 0xdb1   : > { %1688 = vadd.xlane.f32.xlu0 %v1687_v48 }
 0xe3c   : > { %v1686_v49 = vpop.xlane.xlu1 %1685 }
 0xe3d   : > { %v1690_v50 = vmul.f32 0.03125, %v1686_v49 }
 0xe3e   : > { %v1689_v51 = vpop.xlane.xlu0 %1688 }
 0xe3f   : > { %v1692_v23 = vsub.f32 %v1680_v45, %v1690_v50  ;;  %v1691_v52 = vmul.f32 0.03125, %v1689_v51 }
 0xe41   : > { %v1693_v53 = vsub.f32 %v1681_v47, %v1691_v52  ;;  %v1694_v54 = vmul.f32 %v1692_v23, %v1692_v23 }
 0xe43   : > { %v1696_v55 = vsel %vm517_vm1, %v1694_v54, 0.0  ;;  %v1695_v7 = vmul.f32 %v1693_v53, %v1693_v53 }
 0xe44   : > { %1697 = vadd.xlane.f32.xlu1 %v1696_v55 }
 0xe45   : > { %v1699_v56 = vsel %vm517_vm1, %v1695_v7, 0.0 }
 0xe46   : > { %1700 = vadd.xlane.f32.xlu0 %v1699_v56 }
 0xed1   : > { %v1698_v57 = vpop.xlane.xlu1 %1697 }
 0xed2   : > { %v1702_v58 = vmul.f32 0.03125, %v1698_v57 }
 0xed3   : > { %v1701_v11 = vpop.xlane.xlu0 %1700 }
 0xed4   : > { %v1704_v60 = vadd.f32 1e-05, %v1702_v58  ;;  %v1703_v61 = vmul.f32 0.03125, %v1701_v11 }
 0xed6   : > { %2203 = vrsqrt.f32 %v1704_v60  ;;  %v1705_v8 = vadd.f32 1e-05, %v1703_v61 }
 0xed8   : > { %2205 = vrsqrt.f32 %v1705_v8 }
 0xee0   : > { %v2204_v14 = vpop.eup %2203 }
 0xee1   : > { %v1708_v18 = vmul.f32 %v2204_v14, %v1692_v23 }
 0xee2   : > { %v2206_v63 = vpop.eup %2205 }
 0xee3   : > { %v1714_v22 = vmul.f32 %v1922_v62, %v1708_v18  ;;  %v1709_v2 = vmul.f32 %v2206_v63, %v1693_v53 }
 0xee5   : > { %v1720_v3 = vadd.f32 %v1923_v0, %v1714_v22  ;;  %v1715_v6 = vmul.f32 %v1922_v62, %v1709_v2 }
 0xee7   : > { %1722 = vst.msk [vmem:[%s2387_s18] sm:$0xff] %vm517_vm1, %v1720_v3  ;;  %v1721_v9 = vadd.f32 %v1923_v0, %v1715_v6 }
 0xee9   : > { %1723 = vst.msk [vmem:[%s2387_s18 + $0x8] sm:$0xff] %vm517_vm1, %v1721_v9 }
 0xeea PF: > { %s19_s13 = sadd.s32 1, %s2245_s13   ;;  %s2666_s30 = sld [smem:[#allocation2_spill]] }
 0xeeb   : > { %p16_p8 = scmp.ge.s32.totalorder %s19_s13, 6   ;;  %s2667_s10 = sld [smem:[#allocation3_spill]] }
 0xeec   : > { %s2668_s11 = sld [smem:[#allocation4_spill]]  ;;  %s2669_s12 = sld [smem:[#allocation5_spill]] }
 0xeed   :  { %18 = sbr.rel (!%p16_p8) target bundleno = 4 (0x4), region = 111 }

</bundles_post_ra>
